<compile_context>
chip_gen: v7x
topology: tpu7x:2x2x1
jax: 0.10.0
libtpu: 0.0.40
codegen_flags: <defaults>
</compile_context>

<pallas_src>
import functools
import math

import jax
import jax.numpy as jnp
import numpy as np
from jax import lax
from jax.experimental import pallas as pl
from jax.experimental.pallas import tpu as pltpu

LANE = 128      # TPU lane width; each GRU gate group is padded to one full lane block
SUB = 8         # sublane tile; sentence axis is padded to a multiple of this
NGATE = 3       # GRU gates: r, z, n

_HIGHEST = lax.Precision.HIGHEST


# ----------------------------------------------------------------------------------------
# Pallas kernel
# ----------------------------------------------------------------------------------------
def _sentence_encoder_kernel(
    L, NP, H,
    # inputs (whole-array VMEM residents, prepacked by pack_params)
    x_ref,        # (L*NP, D)        bf16, time-major, sublane-padded tokens
    sv_ref,       # (1, 2H)          f32 sentence vector
    wih_ref,      # (D, 3*LANE)      bf16, [R|Z|N] lane blocks, each [fwd H | bwd H | 0]
    whh_ref,      # (LANE, 3*LANE)   bf16, block-diagonal recurrent weights, same layout
    bih_ref,      # (1, 3*LANE)      f32
    bhh_ref,      # (1, 3*LANE)      f32
    w0rnn_ref,    # (LANE, A)        f32, fc0 weights for the [h_f|h_b] part (rows 2H: zero)
    w0sv_ref,     # (2H, A)          f32, fc0 weights for the sentence-vector part
    b0_ref,       # (1, A)           f32
    w1_ref,       # (1, A)           f32, fc1 weights (row)
    b1_ref,       # (1, 1)           f32
    # output
    out_ref,      # (NP, LANE)       f32, [attn-pooled h_f | h_b | 0]
    # scratch
    gi_ref,       # (L*NP, 3*LANE)   f32, precomputed input-to-hidden gate pre-activations
    hs_ref,       # (L*NP, LANE)     f32, fused per-step states
    rnn_ref,      # (L*NP, LANE)     f32, time-aligned [h_f(t) | h_b(t)]
):
    GW = NGATE * LANE

    # --- 1. One batched input-to-hidden matmul (both directions, all time steps) ---------
    gi_ref[...] = (
        jnp.dot(x_ref[...], wih_ref[...], preferred_element_type=jnp.float32)
        + bih_ref[...]
    )

    # Lane masks, computed once (VPU).
    gate_lane = lax.broadcasted_iota(jnp.int32, (NP, GW), 1) % LANE
    fwd_gate_lanes = gate_lane < H                         # fwd lanes of every gate block
    fwd_dir_lanes = lax.broadcasted_iota(jnp.int32, (NP, LANE), 1) < H

    bhh = bhh_ref[...]

    # --- 2. Fused fwd/bwd GRU recurrence, fully unrolled (L is static) -------------------
    #     h = [h_fwd | h_bwd | 0]; one recurrent MXU matmul per step (bf16 in, f32 acc).
    h = jnp.zeros((NP, LANE), jnp.float32)
    for i in range(L):
        gi_f = gi_ref[pl.ds(i * NP, NP), :]                # fwd gates at time i
        gi_b = gi_ref[pl.ds((L - 1 - i) * NP, NP), :]      # bwd gates at time L-1-i
        gi = jnp.where(fwd_gate_lanes, gi_f, gi_b)         # per-lane select (VPU), no shuffle

        gh = jnp.dot(h.astype(jnp.bfloat16), whh_ref[...],
                     preferred_element_type=jnp.float32) + bhh

        # Whole-vreg gate slices (gate blocks are 128-lane aligned); f32 elementwise.
        r = jax.nn.sigmoid(gi[:, 0:LANE] + gh[:, 0:LANE])
        z = jax.nn.sigmoid(gi[:, LANE:2 * LANE] + gh[:, LANE:2 * LANE])
        n = jnp.tanh(gi[:, 2 * LANE:3 * LANE] + r * gh[:, 2 * LANE:3 * LANE])
        h = (1.0 - z) * n + z * h
        hs_ref[pl.ds(i * NP, NP), :] = h

    # --- 3. Re-pair directions per time step: rnn(t) = [h_fwd(t) | h_bwd(t) | 0] ---------
    for t in range(L):
        rnn_ref[pl.ds(t * NP, NP), :] = jnp.where(
            fwd_dir_lanes,
            hs_ref[pl.ds(t * NP, NP), :],
            hs_ref[pl.ds((L - 1 - t) * NP, NP), :])

    # --- 4. Attention scores: fc1(tanh(fc0([h_f, h_b, sv]))) as one batched matmul -------
    sv_att = jnp.dot(sv_ref[...], w0sv_ref[...], preferred_element_type=jnp.float32)  # (1,A)
    att = jnp.tanh(
        jnp.dot(rnn_ref[...], w0rnn_ref[...], preferred_element_type=jnp.float32)
        + sv_att + b0_ref[...]
    )                                                                       # (L*NP, A)
    score = jnp.sum(att * w1_ref[...], axis=-1, keepdims=True) + b1_ref[...]  # (L*NP, 1)

    # --- 5. Softmax over time (per sentence row) + attention-weighted sum ----------------
    s_t = [score[t * NP:(t + 1) * NP, :] for t in range(L)]   # tile-aligned static slices
    m = s_t[0]
    for t in range(1, L):
        m = jnp.maximum(m, s_t[t])
    e_t = [jnp.exp(s - m) for s in s_t]
    denom = e_t[0]
    for t in range(1, L):
        denom = denom + e_t[t]
    inv = 1.0 / denom

    acc = jnp.zeros((NP, LANE), jnp.float32)
    for t in range(L):
        acc = acc + (e_t[t] * inv) * rnn_ref[pl.ds(t * NP, NP), :]

    out_ref[...] = acc        # single lane-dense full-tile store; wrapper trims (N, 2H)


# ----------------------------------------------------------------------------------------
# One-time parameter packing (hoisted out of the per-call path)
# ----------------------------------------------------------------------------------------
def pack_params(params):
    """Repack PyTorch-layout GRU / attention weights into the padded, MXU-friendly layouts
    the kernel consumes. GRU matmul weights are stored as bf16 (f32 accumulation in-kernel)."""
    H = params["w_hh_f"].shape[1]
    D = params["w_ih_f"].shape[1]
    A = params["w0"].shape[0]
    assert 2 * H <= LANE and A <= LANE, "hidden/attention widths must fit one lane block"

    def pack_ih(wf, wb):                       # wf, wb: (3H, K) PyTorch layout
        K = wf.shape[1]
        out = jnp.zeros((K, NGATE * LANE), jnp.float32)
        for g in range(NGATE):
            out = out.at[:, g * LANE:g * LANE + H].set(wf[g * H:(g + 1) * H, :].T)
            out = out.at[:, g * LANE + H:g * LANE + 2 * H].set(wb[g * H:(g + 1) * H, :].T)
        return out

    def pack_hh(wf, wb):                       # (3H, H) each; block-diagonal over directions
        out = jnp.zeros((LANE, NGATE * LANE), jnp.float32)
        for g in range(NGATE):
            out = out.at[0:H, g * LANE:g * LANE + H].set(wf[g * H:(g + 1) * H, :].T)
            out = out.at[H:2 * H, g * LANE + H:g * LANE + 2 * H].set(
                wb[g * H:(g + 1) * H, :].T)
        return out

    def pack_b(bf, bb):                        # (3H,) each
        out = jnp.zeros((1, NGATE * LANE), jnp.float32)
        for g in range(NGATE):
            out = out.at[0, g * LANE:g * LANE + H].set(bf[g * H:(g + 1) * H])
            out = out.at[0, g * LANE + H:g * LANE + 2 * H].set(bb[g * H:(g + 1) * H])
        return out

    w0_t = params["w0"].T.astype(jnp.float32)  # (4H, A)
    w0rnn = jnp.zeros((LANE, A), jnp.float32).at[0:2 * H, :].set(w0_t[0:2 * H, :])

    return {
        "H": H, "D": D, "A": A,
        "wih": pack_ih(params["w_ih_f"], params["w_ih_b"]).astype(jnp.bfloat16),
        "whh": pack_hh(params["w_hh_f"], params["w_hh_b"]).astype(jnp.bfloat16),
        "bih": pack_b(params["b_ih_f"], params["b_ih_b"]),
        "bhh": pack_b(params["b_hh_f"], params["b_hh_b"]),
        "w0rnn": w0rnn,
        "w0sv": w0_t[2 * H:4 * H, :],
        "b0": params["b0"].reshape(1, -1).astype(jnp.float32),
        "w1": params["w1"].reshape(1, -1).astype(jnp.float32),
        "b1": params["b1"].reshape(1, 1).astype(jnp.float32),
    }


# ----------------------------------------------------------------------------------------
# Call wrapper
# ----------------------------------------------------------------------------------------
def sentence_encoder_pallas(x, sv, packed):
    """x: (N, L, D) f32, sv: (2H,) f32 -> (N, 2H) f32."""
    N, L, D = x.shape
    H, A = packed["H"], packed["A"]
    NP = ((N + SUB - 1) // SUB) * SUB

    # Time-major, sublane-padded, bf16 token matrix: row t*NP + n  ->  sentence n, time t.
    x_tm = jnp.transpose(x, (1, 0, 2)).astype(jnp.float32)
    x_p = (jnp.zeros((L, NP, D), jnp.float32).at[:, :N, :].set(x_tm)
           .reshape(L * NP, D).astype(jnp.bfloat16))

    vmem = pl.BlockSpec(memory_space=pltpu.MemorySpace.VMEM)
    args = (
        x_p, sv.reshape(1, 2 * H).astype(jnp.float32),
        packed["wih"], packed["whh"], packed["bih"], packed["bhh"],
        packed["w0rnn"], packed["w0sv"], packed["b0"], packed["w1"], packed["b1"],
    )

    out = pl.pallas_call(
        functools.partial(_sentence_encoder_kernel, L, NP, H),
        out_shape=jax.ShapeDtypeStruct((NP, LANE), jnp.float32),
        in_specs=[vmem] * len(args),
        out_specs=vmem,
        scratch_shapes=[
            pltpu.VMEM((L * NP, NGATE * LANE), jnp.float32),  # gi: input-to-hidden preacts
            pltpu.VMEM((L * NP, LANE), jnp.float32),          # hs: fused per-step states
            pltpu.VMEM((L * NP, LANE), jnp.float32),          # rnn: time-aligned [h_f|h_b]
        ],
    )(*args)
    return out[:N, :2 * H]


# ----------------------------------------------------------------------------------------
# Plain-JAX reference (mirrors the PyTorch forward pass, full f32 precision)
# ----------------------------------------------------------------------------------------
def sentence_encoder_ref(x, sv, params):
    N, L, D = x.shape
    H = params["w_hh_f"].shape[1]

    def cell(x_t, h, wih, whh, bih, bhh):
        gi = jnp.dot(x_t, wih.T, precision=_HIGHEST) + bih
        gh = jnp.dot(h, whh.T, precision=_HIGHEST) + bhh
        r = jax.nn.sigmoid(gi[:, :H] + gh[:, :H])
        z = jax.nn.sigmoid(gi[:, H:2 * H] + gh[:, H:2 * H])
        n = jnp.tanh(gi[:, 2 * H:] + r * gh[:, 2 * H:])
        return (1.0 - z) * n + z * h

    xt = jnp.transpose(x, (1, 0, 2))
    h0 = jnp.zeros((N, H), jnp.float32)

    def sf(h, x_t):
        h = cell(x_t, h, params["w_ih_f"], params["w_hh_f"],
                 params["b_ih_f"][None], params["b_hh_f"][None])
        return h, h

    def sb(h, x_t):
        h = cell(x_t, h, params["w_ih_b"], params["w_hh_b"],
                 params["b_ih_b"][None], params["b_hh_b"][None])
        return h, h

    _, hf = lax.scan(sf, h0, xt)
    _, hb = lax.scan(sb, h0, xt[::-1])
    hb = hb[::-1]

    rnn = jnp.concatenate([hf, hb], axis=-1)          # (L, N, 2H)
    rnn_nl = jnp.transpose(rnn, (1, 0, 2))            # (N, L, 2H)
    svb = jnp.broadcast_to(sv[None, None, :], (N, L, 2 * H))
    q = jnp.concatenate([rnn_nl, svb], axis=-1).reshape(N * L, 4 * H)
    att = jnp.tanh(jnp.dot(q, params["w0"].T, precision=_HIGHEST) + params["b0"][None])
    score = (jnp.dot(att, params["w1"].T, precision=_HIGHEST)
             + params["b1"][None]).reshape(N, L, 1)
    prob = jax.nn.softmax(score, axis=1)
    return jnp.sum(rnn_nl * prob, axis=1)             # (N, 2H)


def init_params(key, D, H, A):
    ks = jax.random.split(key, 12)
    kH = 1.0 / math.sqrt(H)
    k0 = 1.0 / math.sqrt(4 * H)
    k1 = 1.0 / math.sqrt(A)
    u = lambda k, shape, s: jax.random.uniform(k, shape, jnp.float32, -s, s)
    return {
        "w_ih_f": u(ks[0], (3 * H, D), kH), "w_hh_f": u(ks[1], (3 * H, H), kH),
        "b_ih_f": u(ks[2], (3 * H,), kH),   "b_hh_f": u(ks[3], (3 * H,), kH),
        "w_ih_b": u(ks[4], (3 * H, D), kH), "w_hh_b": u(ks[5], (3 * H, H), kH),
        "b_ih_b": u(ks[6], (3 * H,), kH),   "b_hh_b": u(ks[7], (3 * H,), kH),
        "w0": u(ks[8], (A, 4 * H), k0), "b0": u(ks[9], (A,), k0),
        "w1": u(ks[10], (1, A), k1),    "b1": u(ks[11], (1,), k1),
    }


if __name__ == "__main__":
    # num_sentences=4, sentence_length=8, input_size=16, hidden_size_rnn=16, hidden_size_att=32
    N, L, D, H, A = 4, 8, 16, 16, 32

    key = jax.random.PRNGKey(0)
    kx, ksv, kp = jax.random.split(key, 3)
    x = jax.random.normal(kx, (N, L, D), jnp.float32)
    sv = jax.random.normal(ksv, (2 * H,), jnp.float32)
    params = init_params(kp, D, H, A)

    packed = pack_params(params)    # one-time weight repack, hoisted out of the call path

    out = sentence_encoder_pallas(x, sv, packed)
    out = jax.block_until_ready(out)
    assert out.shape == (N, 2 * H)

    ref = sentence_encoder_ref(x, sv, params)
    # Kernel uses bf16 MXU operands with f32 accumulation (HIGHEST dropped per perf review),
    # so compare against the f32-HIGHEST reference with a slightly relaxed tolerance.
    np.testing.assert_allclose(np.asarray(out), np.asarray(ref), atol=1e-2, rtol=1e-2)

    print("KERNEL_OK")
</pallas_src>

<mosaic_0001>
module attributes {stable_mosaic.version = 11 : i64} {
  func.func @_sentence_encoder_kernel(%arg0: memref<64x16xbf16, #tpu.memory_space<vmem>>, %arg1: memref<1x32xf32, #tpu.memory_space<vmem>>, %arg2: memref<16x384xbf16, #tpu.memory_space<vmem>>, %arg3: memref<128x384xbf16, #tpu.memory_space<vmem>>, %arg4: memref<1x384xf32, #tpu.memory_space<vmem>>, %arg5: memref<1x384xf32, #tpu.memory_space<vmem>>, %arg6: memref<128x32xf32, #tpu.memory_space<vmem>>, %arg7: memref<32x32xf32, #tpu.memory_space<vmem>>, %arg8: memref<1x32xf32, #tpu.memory_space<vmem>>, %arg9: memref<1x32xf32, #tpu.memory_space<vmem>>, %arg10: memref<1x1xf32, #tpu.memory_space<vmem>>, %arg11: memref<8x128xf32, #tpu.memory_space<vmem>>, %arg12: memref<64x384xf32, #tpu.memory_space<vmem>>, %arg13: memref<64x128xf32, #tpu.memory_space<vmem>>, %arg14: memref<64x128xf32, #tpu.memory_space<vmem>>) attributes {dimension_semantics = [], scalar_prefetch = 0 : i64, scratch_operands = 3 : i64, tpu.core_type = #tpu.core_type<tc>} {
    %c0 = arith.constant 0 : index
    %c0_0 = arith.constant 0 : index
    %0 = vector.load %arg0[%c0, %c0_0] : memref<64x16xbf16, #tpu.memory_space<vmem>>, vector<64x16xbf16>
    %c0_1 = arith.constant 0 : index
    %c0_2 = arith.constant 0 : index
    %1 = vector.load %arg2[%c0_1, %c0_2] : memref<16x384xbf16, #tpu.memory_space<vmem>>, vector<16x384xbf16>
    %cst = arith.constant dense<0.000000e+00> : vector<64x384xf32>
    %2 = tpu.matmul %0, %1, %cst {dimension_numbers = #tpu.dot_dimension_numbers<[1], [0], [0], [1], [0, 0, 1, 1], [], []>} : vector<64x16xbf16>, vector<16x384xbf16>, vector<64x384xf32> -> vector<64x384xf32>
    %c0_3 = arith.constant 0 : index
    %c0_4 = arith.constant 0 : index
    %3 = vector.load %arg4[%c0_3, %c0_4] : memref<1x384xf32, #tpu.memory_space<vmem>>, vector<1x384xf32>
    %4 = vector.broadcast %3 : vector<1x384xf32> to vector<64x384xf32>
    %5 = arith.addf %2, %4 : vector<64x384xf32>
    %c0_5 = arith.constant 0 : index
    %c0_6 = arith.constant 0 : index
    %6 = vector.load %arg12[%c0_5, %c0_6] : memref<64x384xf32, #tpu.memory_space<vmem>>, vector<64x384xf32>
    tpu.vector_store %arg12[%c0_5, %c0_6], %5 {strides = array<i32>} : memref<64x384xf32, #tpu.memory_space<vmem>>, vector<64x384xf32>,
    %7 = tpu.iota {dimensions = array<i32: 1>} : vector<8x384xi32>
    %c128_i32 = arith.constant 128 : i32
    %c0_i32 = arith.constant 0 : i32
    %8 = arith.cmpi eq, %c128_i32, %c0_i32 : i32
    %c1_i32 = arith.constant 1 : i32
    %9 = arith.select %8, %c1_i32, %c128_i32 : i32
    %10 = vector.broadcast %9 : i32 to vector<8x384xi32>
    %11 = arith.remsi %7, %10 : vector<8x384xi32>
    %c0_i32_7 = arith.constant 0 : i32
    %12 = vector.broadcast %c0_i32_7 : i32 to vector<8x384xi32>
    %13 = arith.cmpi ne, %11, %12 : vector<8x384xi32>
    %c0_i32_8 = arith.constant 0 : i32
    %14 = vector.broadcast %c0_i32_8 : i32 to vector<8x384xi32>
    %15 = arith.cmpi slt, %11, %14 : vector<8x384xi32>
    %c0_i32_9 = arith.constant 0 : i32
    %16 = arith.cmpi slt, %9, %c0_i32_9 : i32
    %17 = vector.broadcast %16 : i1 to vector<8x384xi1>
    %18 = vector.broadcast %17 : vector<8x384xi1> to vector<8x384xi1>
    %19 = arith.xori %15, %18 : vector<8x384xi1>
    %20 = arith.andi %19, %13 : vector<8x384xi1>
    %21 = vector.broadcast %9 : i32 to vector<8x384xi32>
    %22 = arith.addi %11, %21 : vector<8x384xi32>
    %23 = arith.select %20, %22, %11 : vector<8x384xi1>, vector<8x384xi32>
    %c16_i32 = arith.constant 16 : i32
    %24 = vector.broadcast %c16_i32 : i32 to vector<8x384xi32>
    %25 = arith.cmpi slt, %23, %24 : vector<8x384xi32>
    %26 = tpu.iota {dimensions = array<i32: 1>} : vector<8x128xi32>
    %c16_i32_10 = arith.constant 16 : i32
    %27 = vector.broadcast %c16_i32_10 : i32 to vector<8x128xi32>
    %28 = arith.cmpi slt, %26, %27 : vector<8x128xi32>
    %c0_11 = arith.constant 0 : index
    %c0_12 = arith.constant 0 : index
    %29 = vector.load %arg5[%c0_11, %c0_12] : memref<1x384xf32, #tpu.memory_space<vmem>>, vector<1x384xf32>
    %cst_13 = arith.constant 0.000000e+00 : f32
    %30 = vector.broadcast %cst_13 : f32 to vector<8x128xf32>
    %c0_14 = arith.constant 0 : index
    %c0_15 = arith.constant 0 : index
    %31 = vector.load %arg12[%c0_14, %c0_15] : memref<64x384xf32, #tpu.memory_space<vmem>>, vector<8x384xf32>
    %c56 = arith.constant 56 : index
    %c0_16 = arith.constant 0 : index
    %32 = vector.load %arg12[%c56, %c0_16] : memref<64x384xf32, #tpu.memory_space<vmem>>, vector<8x384xf32>
    %33 = arith.select %25, %31, %32 : vector<8x384xi1>, vector<8x384xf32>
    %34 = arith.truncf %30 : vector<8x128xf32> to vector<8x128xbf16>
    %c0_17 = arith.constant 0 : index
    %c0_18 = arith.constant 0 : index
    %35 = vector.load %arg3[%c0_17, %c0_18] : memref<128x384xbf16, #tpu.memory_space<vmem>>, vector<128x384xbf16>
    %cst_19 = arith.constant dense<0.000000e+00> : vector<8x384xf32>
    %36 = tpu.matmul %34, %35, %cst_19 {dimension_numbers = #tpu.dot_dimension_numbers<[1], [0], [0], [1], [0, 0, 1, 1], [], []>} : vector<8x128xbf16>, vector<128x384xbf16>, vector<8x384xf32> -> vector<8x384xf32>
    %37 = vector.broadcast %29 : vector<1x384xf32> to vector<8x384xf32>
    %38 = arith.addf %36, %37 : vector<8x384xf32>
    %39 = vector.extract_strided_slice %33 {offsets = [0, 0], sizes = [8, 128], strides = [1, 1]} : vector<8x384xf32> to vector<8x128xf32>
    %40 = vector.extract_strided_slice %38 {offsets = [0, 0], sizes = [8, 128], strides = [1, 1]} : vector<8x384xf32> to vector<8x128xf32>
    %41 = arith.addf %39, %40 : vector<8x128xf32>
    %42 = arith.negf %41 : vector<8x128xf32>
    %43 = math.exp %42 : vector<8x128xf32>
    %cst_20 = arith.constant 1.000000e+00 : f32
    %44 = vector.broadcast %cst_20 : f32 to vector<8x128xf32>
    %45 = arith.addf %44, %43 : vector<8x128xf32>
    %46 = arith.divf %44, %45 : vector<8x128xf32>
    %47 = vector.extract_strided_slice %33 {offsets = [0, 128], sizes = [8, 128], strides = [1, 1]} : vector<8x384xf32> to vector<8x128xf32>
    %48 = vector.extract_strided_slice %38 {offsets = [0, 128], sizes = [8, 128], strides = [1, 1]} : vector<8x384xf32> to vector<8x128xf32>
    %49 = arith.addf %47, %48 : vector<8x128xf32>
    %50 = arith.negf %49 : vector<8x128xf32>
    %51 = math.exp %50 : vector<8x128xf32>
    %cst_21 = arith.constant 1.000000e+00 : f32
    %52 = vector.broadcast %cst_21 : f32 to vector<8x128xf32>
    %53 = arith.addf %52, %51 : vector<8x128xf32>
    %54 = arith.divf %52, %53 : vector<8x128xf32>
    %55 = vector.extract_strided_slice %33 {offsets = [0, 256], sizes = [8, 128], strides = [1, 1]} : vector<8x384xf32> to vector<8x128xf32>
    %56 = vector.extract_strided_slice %38 {offsets = [0, 256], sizes = [8, 128], strides = [1, 1]} : vector<8x384xf32> to vector<8x128xf32>
    %57 = arith.mulf %46, %56 : vector<8x128xf32>
    %58 = arith.addf %55, %57 : vector<8x128xf32>
    %59 = math.tanh %58 : vector<8x128xf32>
    %cst_22 = arith.constant 1.000000e+00 : f32
    %60 = vector.broadcast %cst_22 : f32 to vector<8x128xf32>
    %61 = arith.subf %60, %54 : vector<8x128xf32>
    %62 = arith.mulf %61, %59 : vector<8x128xf32>
    %63 = arith.mulf %54, %30 : vector<8x128xf32>
    %64 = arith.addf %62, %63 : vector<8x128xf32>
    %c0_23 = arith.constant 0 : index
    %c0_24 = arith.constant 0 : index
    %65 = vector.load %arg13[%c0_23, %c0_24] : memref<64x128xf32, #tpu.memory_space<vmem>>, vector<8x128xf32>
    tpu.vector_store %arg13[%c0_23, %c0_24], %64 {strides = array<i32>} : memref<64x128xf32, #tpu.memory_space<vmem>>, vector<8x128xf32>,
    %c8 = arith.constant 8 : index
    %c0_25 = arith.constant 0 : index
    %66 = vector.load %arg12[%c8, %c0_25] : memref<64x384xf32, #tpu.memory_space<vmem>>, vector<8x384xf32>
    %c48 = arith.constant 48 : index
    %c0_26 = arith.constant 0 : index
    %67 = vector.load %arg12[%c48, %c0_26] : memref<64x384xf32, #tpu.memory_space<vmem>>, vector<8x384xf32>
    %68 = arith.select %25, %66, %67 : vector<8x384xi1>, vector<8x384xf32>
    %69 = arith.truncf %64 : vector<8x128xf32> to vector<8x128xbf16>
    %c0_27 = arith.constant 0 : index
    %c0_28 = arith.constant 0 : index
    %70 = vector.load %arg3[%c0_27, %c0_28] : memref<128x384xbf16, #tpu.memory_space<vmem>>, vector<128x384xbf16>
    %cst_29 = arith.constant dense<0.000000e+00> : vector<8x384xf32>
    %71 = tpu.matmul %69, %70, %cst_29 {dimension_numbers = #tpu.dot_dimension_numbers<[1], [0], [0], [1], [0, 0, 1, 1], [], []>} : vector<8x128xbf16>, vector<128x384xbf16>, vector<8x384xf32> -> vector<8x384xf32>
    %72 = vector.broadcast %29 : vector<1x384xf32> to vector<8x384xf32>
    %73 = arith.addf %71, %72 : vector<8x384xf32>
    %74 = vector.extract_strided_slice %68 {offsets = [0, 0], sizes = [8, 128], strides = [1, 1]} : vector<8x384xf32> to vector<8x128xf32>
    %75 = vector.extract_strided_slice %73 {offsets = [0, 0], sizes = [8, 128], strides = [1, 1]} : vector<8x384xf32> to vector<8x128xf32>
    %76 = arith.addf %74, %75 : vector<8x128xf32>
    %77 = arith.negf %76 : vector<8x128xf32>
    %78 = math.exp %77 : vector<8x128xf32>
    %cst_30 = arith.constant 1.000000e+00 : f32
    %79 = vector.broadcast %cst_30 : f32 to vector<8x128xf32>
    %80 = arith.addf %79, %78 : vector<8x128xf32>
    %81 = arith.divf %79, %80 : vector<8x128xf32>
    %82 = vector.extract_strided_slice %68 {offsets = [0, 128], sizes = [8, 128], strides = [1, 1]} : vector<8x384xf32> to vector<8x128xf32>
    %83 = vector.extract_strided_slice %73 {offsets = [0, 128], sizes = [8, 128], strides = [1, 1]} : vector<8x384xf32> to vector<8x128xf32>
    %84 = arith.addf %82, %83 : vector<8x128xf32>
    %85 = arith.negf %84 : vector<8x128xf32>
    %86 = math.exp %85 : vector<8x128xf32>
    %cst_31 = arith.constant 1.000000e+00 : f32
    %87 = vector.broadcast %cst_31 : f32 to vector<8x128xf32>
    %88 = arith.addf %87, %86 : vector<8x128xf32>
    %89 = arith.divf %87, %88 : vector<8x128xf32>
    %90 = vector.extract_strided_slice %68 {offsets = [0, 256], sizes = [8, 128], strides = [1, 1]} : vector<8x384xf32> to vector<8x128xf32>
    %91 = vector.extract_strided_slice %73 {offsets = [0, 256], sizes = [8, 128], strides = [1, 1]} : vector<8x384xf32> to vector<8x128xf32>
    %92 = arith.mulf %81, %91 : vector<8x128xf32>
    %93 = arith.addf %90, %92 : vector<8x128xf32>
    %94 = math.tanh %93 : vector<8x128xf32>
    %cst_32 = arith.constant 1.000000e+00 : f32
    %95 = vector.broadcast %cst_32 : f32 to vector<8x128xf32>
    %96 = arith.subf %95, %89 : vector<8x128xf32>
    %97 = arith.mulf %96, %94 : vector<8x128xf32>
    %98 = arith.mulf %89, %64 : vector<8x128xf32>
    %99 = arith.addf %97, %98 : vector<8x128xf32>
    %c8_33 = arith.constant 8 : index
    %c0_34 = arith.constant 0 : index
    %100 = vector.load %arg13[%c8_33, %c0_34] : memref<64x128xf32, #tpu.memory_space<vmem>>, vector<8x128xf32>
    tpu.vector_store %arg13[%c8_33, %c0_34], %99 {strides = array<i32>} : memref<64x128xf32, #tpu.memory_space<vmem>>, vector<8x128xf32>,
    %c16 = arith.constant 16 : index
    %c0_35 = arith.constant 0 : index
    %101 = vector.load %arg12[%c16, %c0_35] : memref<64x384xf32, #tpu.memory_space<vmem>>, vector<8x384xf32>
    %c40 = arith.constant 40 : index
    %c0_36 = arith.constant 0 : index
    %102 = vector.load %arg12[%c40, %c0_36] : memref<64x384xf32, #tpu.memory_space<vmem>>, vector<8x384xf32>
    %103 = arith.select %25, %101, %102 : vector<8x384xi1>, vector<8x384xf32>
    %104 = arith.truncf %99 : vector<8x128xf32> to vector<8x128xbf16>
    %c0_37 = arith.constant 0 : index
    %c0_38 = arith.constant 0 : index
    %105 = vector.load %arg3[%c0_37, %c0_38] : memref<128x384xbf16, #tpu.memory_space<vmem>>, vector<128x384xbf16>
    %cst_39 = arith.constant dense<0.000000e+00> : vector<8x384xf32>
    %106 = tpu.matmul %104, %105, %cst_39 {dimension_numbers = #tpu.dot_dimension_numbers<[1], [0], [0], [1], [0, 0, 1, 1], [], []>} : vector<8x128xbf16>, vector<128x384xbf16>, vector<8x384xf32> -> vector<8x384xf32>
    %107 = vector.broadcast %29 : vector<1x384xf32> to vector<8x384xf32>
    %108 = arith.addf %106, %107 : vector<8x384xf32>
    %109 = vector.extract_strided_slice %103 {offsets = [0, 0], sizes = [8, 128], strides = [1, 1]} : vector<8x384xf32> to vector<8x128xf32>
    %110 = vector.extract_strided_slice %108 {offsets = [0, 0], sizes = [8, 128], strides = [1, 1]} : vector<8x384xf32> to vector<8x128xf32>
    %111 = arith.addf %109, %110 : vector<8x128xf32>
    %112 = arith.negf %111 : vector<8x128xf32>
    %113 = math.exp %112 : vector<8x128xf32>
    %cst_40 = arith.constant 1.000000e+00 : f32
    %114 = vector.broadcast %cst_40 : f32 to vector<8x128xf32>
    %115 = arith.addf %114, %113 : vector<8x128xf32>
    %116 = arith.divf %114, %115 : vector<8x128xf32>
    %117 = vector.extract_strided_slice %103 {offsets = [0, 128], sizes = [8, 128], strides = [1, 1]} : vector<8x384xf32> to vector<8x128xf32>
    %118 = vector.extract_strided_slice %108 {offsets = [0, 128], sizes = [8, 128], strides = [1, 1]} : vector<8x384xf32> to vector<8x128xf32>
    %119 = arith.addf %117, %118 : vector<8x128xf32>
    %120 = arith.negf %119 : vector<8x128xf32>
    %121 = math.exp %120 : vector<8x128xf32>
    %cst_41 = arith.constant 1.000000e+00 : f32
    %122 = vector.broadcast %cst_41 : f32 to vector<8x128xf32>
    %123 = arith.addf %122, %121 : vector<8x128xf32>
    %124 = arith.divf %122, %123 : vector<8x128xf32>
    %125 = vector.extract_strided_slice %103 {offsets = [0, 256], sizes = [8, 128], strides = [1, 1]} : vector<8x384xf32> to vector<8x128xf32>
    %126 = vector.extract_strided_slice %108 {offsets = [0, 256], sizes = [8, 128], strides = [1, 1]} : vector<8x384xf32> to vector<8x128xf32>
    %127 = arith.mulf %116, %126 : vector<8x128xf32>
    %128 = arith.addf %125, %127 : vector<8x128xf32>
    %129 = math.tanh %128 : vector<8x128xf32>
    %cst_42 = arith.constant 1.000000e+00 : f32
    %130 = vector.broadcast %cst_42 : f32 to vector<8x128xf32>
    %131 = arith.subf %130, %124 : vector<8x128xf32>
    %132 = arith.mulf %131, %129 : vector<8x128xf32>
    %133 = arith.mulf %124, %99 : vector<8x128xf32>
    %134 = arith.addf %132, %133 : vector<8x128xf32>
    %c16_43 = arith.constant 16 : index
    %c0_44 = arith.constant 0 : index
    %135 = vector.load %arg13[%c16_43, %c0_44] : memref<64x128xf32, #tpu.memory_space<vmem>>, vector<8x128xf32>
    tpu.vector_store %arg13[%c16_43, %c0_44], %134 {strides = array<i32>} : memref<64x128xf32, #tpu.memory_space<vmem>>, vector<8x128xf32>,
    %c24 = arith.constant 24 : index
    %c0_45 = arith.constant 0 : index
    %136 = vector.load %arg12[%c24, %c0_45] : memref<64x384xf32, #tpu.memory_space<vmem>>, vector<8x384xf32>
    %c32 = arith.constant 32 : index
    %c0_46 = arith.constant 0 : index
    %137 = vector.load %arg12[%c32, %c0_46] : memref<64x384xf32, #tpu.memory_space<vmem>>, vector<8x384xf32>
    %138 = arith.select %25, %136, %137 : vector<8x384xi1>, vector<8x384xf32>
    %139 = arith.truncf %134 : vector<8x128xf32> to vector<8x128xbf16>
    %c0_47 = arith.constant 0 : index
    %c0_48 = arith.constant 0 : index
    %140 = vector.load %arg3[%c0_47, %c0_48] : memref<128x384xbf16, #tpu.memory_space<vmem>>, vector<128x384xbf16>
    %cst_49 = arith.constant dense<0.000000e+00> : vector<8x384xf32>
    %141 = tpu.matmul %139, %140, %cst_49 {dimension_numbers = #tpu.dot_dimension_numbers<[1], [0], [0], [1], [0, 0, 1, 1], [], []>} : vector<8x128xbf16>, vector<128x384xbf16>, vector<8x384xf32> -> vector<8x384xf32>
    %142 = vector.broadcast %29 : vector<1x384xf32> to vector<8x384xf32>
    %143 = arith.addf %141, %142 : vector<8x384xf32>
    %144 = vector.extract_strided_slice %138 {offsets = [0, 0], sizes = [8, 128], strides = [1, 1]} : vector<8x384xf32> to vector<8x128xf32>
    %145 = vector.extract_strided_slice %143 {offsets = [0, 0], sizes = [8, 128], strides = [1, 1]} : vector<8x384xf32> to vector<8x128xf32>
    %146 = arith.addf %144, %145 : vector<8x128xf32>
    %147 = arith.negf %146 : vector<8x128xf32>
    %148 = math.exp %147 : vector<8x128xf32>
    %cst_50 = arith.constant 1.000000e+00 : f32
    %149 = vector.broadcast %cst_50 : f32 to vector<8x128xf32>
    %150 = arith.addf %149, %148 : vector<8x128xf32>
    %151 = arith.divf %149, %150 : vector<8x128xf32>
    %152 = vector.extract_strided_slice %138 {offsets = [0, 128], sizes = [8, 128], strides = [1, 1]} : vector<8x384xf32> to vector<8x128xf32>
    %153 = vector.extract_strided_slice %143 {offsets = [0, 128], sizes = [8, 128], strides = [1, 1]} : vector<8x384xf32> to vector<8x128xf32>
    %154 = arith.addf %152, %153 : vector<8x128xf32>
    %155 = arith.negf %154 : vector<8x128xf32>
    %156 = math.exp %155 : vector<8x128xf32>
    %cst_51 = arith.constant 1.000000e+00 : f32
    %157 = vector.broadcast %cst_51 : f32 to vector<8x128xf32>
    %158 = arith.addf %157, %156 : vector<8x128xf32>
    %159 = arith.divf %157, %158 : vector<8x128xf32>
    %160 = vector.extract_strided_slice %138 {offsets = [0, 256], sizes = [8, 128], strides = [1, 1]} : vector<8x384xf32> to vector<8x128xf32>
    %161 = vector.extract_strided_slice %143 {offsets = [0, 256], sizes = [8, 128], strides = [1, 1]} : vector<8x384xf32> to vector<8x128xf32>
    %162 = arith.mulf %151, %161 : vector<8x128xf32>
    %163 = arith.addf %160, %162 : vector<8x128xf32>
    %164 = math.tanh %163 : vector<8x128xf32>
    %cst_52 = arith.constant 1.000000e+00 : f32
    %165 = vector.broadcast %cst_52 : f32 to vector<8x128xf32>
    %166 = arith.subf %165, %159 : vector<8x128xf32>
    %167 = arith.mulf %166, %164 : vector<8x128xf32>
    %168 = arith.mulf %159, %134 : vector<8x128xf32>
    %169 = arith.addf %167, %168 : vector<8x128xf32>
    %c24_53 = arith.constant 24 : index
    %c0_54 = arith.constant 0 : index
    %170 = vector.load %arg13[%c24_53, %c0_54] : memref<64x128xf32, #tpu.memory_space<vmem>>, vector<8x128xf32>
    tpu.vector_store %arg13[%c24_53, %c0_54], %169 {strides = array<i32>} : memref<64x128xf32, #tpu.memory_space<vmem>>, vector<8x128xf32>,
    %c32_55 = arith.constant 32 : index
    %c0_56 = arith.constant 0 : index
    %171 = vector.load %arg12[%c32_55, %c0_56] : memref<64x384xf32, #tpu.memory_space<vmem>>, vector<8x384xf32>
    %c24_57 = arith.constant 24 : index
    %c0_58 = arith.constant 0 : index
    %172 = vector.load %arg12[%c24_57, %c0_58] : memref<64x384xf32, #tpu.memory_space<vmem>>, vector<8x384xf32>
    %173 = arith.select %25, %171, %172 : vector<8x384xi1>, vector<8x384xf32>
    %174 = arith.truncf %169 : vector<8x128xf32> to vector<8x128xbf16>
    %c0_59 = arith.constant 0 : index
    %c0_60 = arith.constant 0 : index
    %175 = vector.load %arg3[%c0_59, %c0_60] : memref<128x384xbf16, #tpu.memory_space<vmem>>, vector<128x384xbf16>
    %cst_61 = arith.constant dense<0.000000e+00> : vector<8x384xf32>
    %176 = tpu.matmul %174, %175, %cst_61 {dimension_numbers = #tpu.dot_dimension_numbers<[1], [0], [0], [1], [0, 0, 1, 1], [], []>} : vector<8x128xbf16>, vector<128x384xbf16>, vector<8x384xf32> -> vector<8x384xf32>
    %177 = vector.broadcast %29 : vector<1x384xf32> to vector<8x384xf32>
    %178 = arith.addf %176, %177 : vector<8x384xf32>
    %179 = vector.extract_strided_slice %173 {offsets = [0, 0], sizes = [8, 128], strides = [1, 1]} : vector<8x384xf32> to vector<8x128xf32>
    %180 = vector.extract_strided_slice %178 {offsets = [0, 0], sizes = [8, 128], strides = [1, 1]} : vector<8x384xf32> to vector<8x128xf32>
    %181 = arith.addf %179, %180 : vector<8x128xf32>
    %182 = arith.negf %181 : vector<8x128xf32>
    %183 = math.exp %182 : vector<8x128xf32>
    %cst_62 = arith.constant 1.000000e+00 : f32
    %184 = vector.broadcast %cst_62 : f32 to vector<8x128xf32>
    %185 = arith.addf %184, %183 : vector<8x128xf32>
    %186 = arith.divf %184, %185 : vector<8x128xf32>
    %187 = vector.extract_strided_slice %173 {offsets = [0, 128], sizes = [8, 128], strides = [1, 1]} : vector<8x384xf32> to vector<8x128xf32>
    %188 = vector.extract_strided_slice %178 {offsets = [0, 128], sizes = [8, 128], strides = [1, 1]} : vector<8x384xf32> to vector<8x128xf32>
    %189 = arith.addf %187, %188 : vector<8x128xf32>
    %190 = arith.negf %189 : vector<8x128xf32>
    %191 = math.exp %190 : vector<8x128xf32>
    %cst_63 = arith.constant 1.000000e+00 : f32
    %192 = vector.broadcast %cst_63 : f32 to vector<8x128xf32>
    %193 = arith.addf %192, %191 : vector<8x128xf32>
    %194 = arith.divf %192, %193 : vector<8x128xf32>
    %195 = vector.extract_strided_slice %173 {offsets = [0, 256], sizes = [8, 128], strides = [1, 1]} : vector<8x384xf32> to vector<8x128xf32>
    %196 = vector.extract_strided_slice %178 {offsets = [0, 256], sizes = [8, 128], strides = [1, 1]} : vector<8x384xf32> to vector<8x128xf32>
    %197 = arith.mulf %186, %196 : vector<8x128xf32>
    %198 = arith.addf %195, %197 : vector<8x128xf32>
    %199 = math.tanh %198 : vector<8x128xf32>
    %cst_64 = arith.constant 1.000000e+00 : f32
    %200 = vector.broadcast %cst_64 : f32 to vector<8x128xf32>
    %201 = arith.subf %200, %194 : vector<8x128xf32>
    %202 = arith.mulf %201, %199 : vector<8x128xf32>
    %203 = arith.mulf %194, %169 : vector<8x128xf32>
    %204 = arith.addf %202, %203 : vector<8x128xf32>
    %c32_65 = arith.constant 32 : index
    %c0_66 = arith.constant 0 : index
    %205 = vector.load %arg13[%c32_65, %c0_66] : memref<64x128xf32, #tpu.memory_space<vmem>>, vector<8x128xf32>
    tpu.vector_store %arg13[%c32_65, %c0_66], %204 {strides = array<i32>} : memref<64x128xf32, #tpu.memory_space<vmem>>, vector<8x128xf32>,
    %c40_67 = arith.constant 40 : index
    %c0_68 = arith.constant 0 : index
    %206 = vector.load %arg12[%c40_67, %c0_68] : memref<64x384xf32, #tpu.memory_space<vmem>>, vector<8x384xf32>
    %c16_69 = arith.constant 16 : index
    %c0_70 = arith.constant 0 : index
    %207 = vector.load %arg12[%c16_69, %c0_70] : memref<64x384xf32, #tpu.memory_space<vmem>>, vector<8x384xf32>
    %208 = arith.select %25, %206, %207 : vector<8x384xi1>, vector<8x384xf32>
    %209 = arith.truncf %204 : vector<8x128xf32> to vector<8x128xbf16>
    %c0_71 = arith.constant 0 : index
    %c0_72 = arith.constant 0 : index
    %210 = vector.load %arg3[%c0_71, %c0_72] : memref<128x384xbf16, #tpu.memory_space<vmem>>, vector<128x384xbf16>
    %cst_73 = arith.constant dense<0.000000e+00> : vector<8x384xf32>
    %211 = tpu.matmul %209, %210, %cst_73 {dimension_numbers = #tpu.dot_dimension_numbers<[1], [0], [0], [1], [0, 0, 1, 1], [], []>} : vector<8x128xbf16>, vector<128x384xbf16>, vector<8x384xf32> -> vector<8x384xf32>
    %212 = vector.broadcast %29 : vector<1x384xf32> to vector<8x384xf32>
    %213 = arith.addf %211, %212 : vector<8x384xf32>
    %214 = vector.extract_strided_slice %208 {offsets = [0, 0], sizes = [8, 128], strides = [1, 1]} : vector<8x384xf32> to vector<8x128xf32>
    %215 = vector.extract_strided_slice %213 {offsets = [0, 0], sizes = [8, 128], strides = [1, 1]} : vector<8x384xf32> to vector<8x128xf32>
    %216 = arith.addf %214, %215 : vector<8x128xf32>
    %217 = arith.negf %216 : vector<8x128xf32>
    %218 = math.exp %217 : vector<8x128xf32>
    %cst_74 = arith.constant 1.000000e+00 : f32
    %219 = vector.broadcast %cst_74 : f32 to vector<8x128xf32>
    %220 = arith.addf %219, %218 : vector<8x128xf32>
    %221 = arith.divf %219, %220 : vector<8x128xf32>
    %222 = vector.extract_strided_slice %208 {offsets = [0, 128], sizes = [8, 128], strides = [1, 1]} : vector<8x384xf32> to vector<8x128xf32>
    %223 = vector.extract_strided_slice %213 {offsets = [0, 128], sizes = [8, 128], strides = [1, 1]} : vector<8x384xf32> to vector<8x128xf32>
    %224 = arith.addf %222, %223 : vector<8x128xf32>
    %225 = arith.negf %224 : vector<8x128xf32>
    %226 = math.exp %225 : vector<8x128xf32>
    %cst_75 = arith.constant 1.000000e+00 : f32
    %227 = vector.broadcast %cst_75 : f32 to vector<8x128xf32>
    %228 = arith.addf %227, %226 : vector<8x128xf32>
    %229 = arith.divf %227, %228 : vector<8x128xf32>
    %230 = vector.extract_strided_slice %208 {offsets = [0, 256], sizes = [8, 128], strides = [1, 1]} : vector<8x384xf32> to vector<8x128xf32>
    %231 = vector.extract_strided_slice %213 {offsets = [0, 256], sizes = [8, 128], strides = [1, 1]} : vector<8x384xf32> to vector<8x128xf32>
    %232 = arith.mulf %221, %231 : vector<8x128xf32>
    %233 = arith.addf %230, %232 : vector<8x128xf32>
    %234 = math.tanh %233 : vector<8x128xf32>
    %cst_76 = arith.constant 1.000000e+00 : f32
    %235 = vector.broadcast %cst_76 : f32 to vector<8x128xf32>
    %236 = arith.subf %235, %229 : vector<8x128xf32>
    %237 = arith.mulf %236, %234 : vector<8x128xf32>
    %238 = arith.mulf %229, %204 : vector<8x128xf32>
    %239 = arith.addf %237, %238 : vector<8x128xf32>
    %c40_77 = arith.constant 40 : index
    %c0_78 = arith.constant 0 : index
    %240 = vector.load %arg13[%c40_77, %c0_78] : memref<64x128xf32, #tpu.memory_space<vmem>>, vector<8x128xf32>
    tpu.vector_store %arg13[%c40_77, %c0_78], %239 {strides = array<i32>} : memref<64x128xf32, #tpu.memory_space<vmem>>, vector<8x128xf32>,
    %c48_79 = arith.constant 48 : index
    %c0_80 = arith.constant 0 : index
    %241 = vector.load %arg12[%c48_79, %c0_80] : memref<64x384xf32, #tpu.memory_space<vmem>>, vector<8x384xf32>
    %c8_81 = arith.constant 8 : index
    %c0_82 = arith.constant 0 : index
    %242 = vector.load %arg12[%c8_81, %c0_82] : memref<64x384xf32, #tpu.memory_space<vmem>>, vector<8x384xf32>
    %243 = arith.select %25, %241, %242 : vector<8x384xi1>, vector<8x384xf32>
    %244 = arith.truncf %239 : vector<8x128xf32> to vector<8x128xbf16>
    %c0_83 = arith.constant 0 : index
    %c0_84 = arith.constant 0 : index
    %245 = vector.load %arg3[%c0_83, %c0_84] : memref<128x384xbf16, #tpu.memory_space<vmem>>, vector<128x384xbf16>
    %cst_85 = arith.constant dense<0.000000e+00> : vector<8x384xf32>
    %246 = tpu.matmul %244, %245, %cst_85 {dimension_numbers = #tpu.dot_dimension_numbers<[1], [0], [0], [1], [0, 0, 1, 1], [], []>} : vector<8x128xbf16>, vector<128x384xbf16>, vector<8x384xf32> -> vector<8x384xf32>
    %247 = vector.broadcast %29 : vector<1x384xf32> to vector<8x384xf32>
    %248 = arith.addf %246, %247 : vector<8x384xf32>
    %249 = vector.extract_strided_slice %243 {offsets = [0, 0], sizes = [8, 128], strides = [1, 1]} : vector<8x384xf32> to vector<8x128xf32>
    %250 = vector.extract_strided_slice %248 {offsets = [0, 0], sizes = [8, 128], strides = [1, 1]} : vector<8x384xf32> to vector<8x128xf32>
    %251 = arith.addf %249, %250 : vector<8x128xf32>
    %252 = arith.negf %251 : vector<8x128xf32>
    %253 = math.exp %252 : vector<8x128xf32>
    %cst_86 = arith.constant 1.000000e+00 : f32
    %254 = vector.broadcast %cst_86 : f32 to vector<8x128xf32>
    %255 = arith.addf %254, %253 : vector<8x128xf32>
    %256 = arith.divf %254, %255 : vector<8x128xf32>
    %257 = vector.extract_strided_slice %243 {offsets = [0, 128], sizes = [8, 128], strides = [1, 1]} : vector<8x384xf32> to vector<8x128xf32>
    %258 = vector.extract_strided_slice %248 {offsets = [0, 128], sizes = [8, 128], strides = [1, 1]} : vector<8x384xf32> to vector<8x128xf32>
    %259 = arith.addf %257, %258 : vector<8x128xf32>
    %260 = arith.negf %259 : vector<8x128xf32>
    %261 = math.exp %260 : vector<8x128xf32>
    %cst_87 = arith.constant 1.000000e+00 : f32
    %262 = vector.broadcast %cst_87 : f32 to vector<8x128xf32>
    %263 = arith.addf %262, %261 : vector<8x128xf32>
    %264 = arith.divf %262, %263 : vector<8x128xf32>
    %265 = vector.extract_strided_slice %243 {offsets = [0, 256], sizes = [8, 128], strides = [1, 1]} : vector<8x384xf32> to vector<8x128xf32>
    %266 = vector.extract_strided_slice %248 {offsets = [0, 256], sizes = [8, 128], strides = [1, 1]} : vector<8x384xf32> to vector<8x128xf32>
    %267 = arith.mulf %256, %266 : vector<8x128xf32>
    %268 = arith.addf %265, %267 : vector<8x128xf32>
    %269 = math.tanh %268 : vector<8x128xf32>
    %cst_88 = arith.constant 1.000000e+00 : f32
    %270 = vector.broadcast %cst_88 : f32 to vector<8x128xf32>
    %271 = arith.subf %270, %264 : vector<8x128xf32>
    %272 = arith.mulf %271, %269 : vector<8x128xf32>
    %273 = arith.mulf %264, %239 : vector<8x128xf32>
    %274 = arith.addf %272, %273 : vector<8x128xf32>
    %c48_89 = arith.constant 48 : index
    %c0_90 = arith.constant 0 : index
    %275 = vector.load %arg13[%c48_89, %c0_90] : memref<64x128xf32, #tpu.memory_space<vmem>>, vector<8x128xf32>
    tpu.vector_store %arg13[%c48_89, %c0_90], %274 {strides = array<i32>} : memref<64x128xf32, #tpu.memory_space<vmem>>, vector<8x128xf32>,
    %c56_91 = arith.constant 56 : index
    %c0_92 = arith.constant 0 : index
    %276 = vector.load %arg12[%c56_91, %c0_92] : memref<64x384xf32, #tpu.memory_space<vmem>>, vector<8x384xf32>
    %c0_93 = arith.constant 0 : index
    %c0_94 = arith.constant 0 : index
    %277 = vector.load %arg12[%c0_93, %c0_94] : memref<64x384xf32, #tpu.memory_space<vmem>>, vector<8x384xf32>
    %278 = arith.select %25, %276, %277 : vector<8x384xi1>, vector<8x384xf32>
    %279 = arith.truncf %274 : vector<8x128xf32> to vector<8x128xbf16>
    %c0_95 = arith.constant 0 : index
    %c0_96 = arith.constant 0 : index
    %280 = vector.load %arg3[%c0_95, %c0_96] : memref<128x384xbf16, #tpu.memory_space<vmem>>, vector<128x384xbf16>
    %cst_97 = arith.constant dense<0.000000e+00> : vector<8x384xf32>
    %281 = tpu.matmul %279, %280, %cst_97 {dimension_numbers = #tpu.dot_dimension_numbers<[1], [0], [0], [1], [0, 0, 1, 1], [], []>} : vector<8x128xbf16>, vector<128x384xbf16>, vector<8x384xf32> -> vector<8x384xf32>
    %282 = vector.broadcast %29 : vector<1x384xf32> to vector<8x384xf32>
    %283 = arith.addf %281, %282 : vector<8x384xf32>
    %284 = vector.extract_strided_slice %278 {offsets = [0, 0], sizes = [8, 128], strides = [1, 1]} : vector<8x384xf32> to vector<8x128xf32>
    %285 = vector.extract_strided_slice %283 {offsets = [0, 0], sizes = [8, 128], strides = [1, 1]} : vector<8x384xf32> to vector<8x128xf32>
    %286 = arith.addf %284, %285 : vector<8x128xf32>
    %287 = arith.negf %286 : vector<8x128xf32>
    %288 = math.exp %287 : vector<8x128xf32>
    %cst_98 = arith.constant 1.000000e+00 : f32
    %289 = vector.broadcast %cst_98 : f32 to vector<8x128xf32>
    %290 = arith.addf %289, %288 : vector<8x128xf32>
    %291 = arith.divf %289, %290 : vector<8x128xf32>
    %292 = vector.extract_strided_slice %278 {offsets = [0, 128], sizes = [8, 128], strides = [1, 1]} : vector<8x384xf32> to vector<8x128xf32>
    %293 = vector.extract_strided_slice %283 {offsets = [0, 128], sizes = [8, 128], strides = [1, 1]} : vector<8x384xf32> to vector<8x128xf32>
    %294 = arith.addf %292, %293 : vector<8x128xf32>
    %295 = arith.negf %294 : vector<8x128xf32>
    %296 = math.exp %295 : vector<8x128xf32>
    %cst_99 = arith.constant 1.000000e+00 : f32
    %297 = vector.broadcast %cst_99 : f32 to vector<8x128xf32>
    %298 = arith.addf %297, %296 : vector<8x128xf32>
    %299 = arith.divf %297, %298 : vector<8x128xf32>
    %300 = vector.extract_strided_slice %278 {offsets = [0, 256], sizes = [8, 128], strides = [1, 1]} : vector<8x384xf32> to vector<8x128xf32>
    %301 = vector.extract_strided_slice %283 {offsets = [0, 256], sizes = [8, 128], strides = [1, 1]} : vector<8x384xf32> to vector<8x128xf32>
    %302 = arith.mulf %291, %301 : vector<8x128xf32>
    %303 = arith.addf %300, %302 : vector<8x128xf32>
    %304 = math.tanh %303 : vector<8x128xf32>
    %cst_100 = arith.constant 1.000000e+00 : f32
    %305 = vector.broadcast %cst_100 : f32 to vector<8x128xf32>
    %306 = arith.subf %305, %299 : vector<8x128xf32>
    %307 = arith.mulf %306, %304 : vector<8x128xf32>
    %308 = arith.mulf %299, %274 : vector<8x128xf32>
    %309 = arith.addf %307, %308 : vector<8x128xf32>
    %c56_101 = arith.constant 56 : index
    %c0_102 = arith.constant 0 : index
    %310 = vector.load %arg13[%c56_101, %c0_102] : memref<64x128xf32, #tpu.memory_space<vmem>>, vector<8x128xf32>
    tpu.vector_store %arg13[%c56_101, %c0_102], %309 {strides = array<i32>} : memref<64x128xf32, #tpu.memory_space<vmem>>, vector<8x128xf32>,
    %c0_103 = arith.constant 0 : index
    %c0_104 = arith.constant 0 : index
    %311 = vector.load %arg13[%c0_103, %c0_104] : memref<64x128xf32, #tpu.memory_space<vmem>>, vector<8x128xf32>
    %c56_105 = arith.constant 56 : index
    %c0_106 = arith.constant 0 : index
    %312 = vector.load %arg13[%c56_105, %c0_106] : memref<64x128xf32, #tpu.memory_space<vmem>>, vector<8x128xf32>
    %313 = arith.select %28, %311, %312 : vector<8x128xi1>, vector<8x128xf32>
    %c0_107 = arith.constant 0 : index
    %c0_108 = arith.constant 0 : index
    %314 = vector.load %arg14[%c0_107, %c0_108] : memref<64x128xf32, #tpu.memory_space<vmem>>, vector<8x128xf32>
    tpu.vector_store %arg14[%c0_107, %c0_108], %313 {strides = array<i32>} : memref<64x128xf32, #tpu.memory_space<vmem>>, vector<8x128xf32>,
    %c8_109 = arith.constant 8 : index
    %c0_110 = arith.constant 0 : index
    %315 = vector.load %arg13[%c8_109, %c0_110] : memref<64x128xf32, #tpu.memory_space<vmem>>, vector<8x128xf32>
    %c48_111 = arith.constant 48 : index
    %c0_112 = arith.constant 0 : index
    %316 = vector.load %arg13[%c48_111, %c0_112] : memref<64x128xf32, #tpu.memory_space<vmem>>, vector<8x128xf32>
    %317 = arith.select %28, %315, %316 : vector<8x128xi1>, vector<8x128xf32>
    %c8_113 = arith.constant 8 : index
    %c0_114 = arith.constant 0 : index
    %318 = vector.load %arg14[%c8_113, %c0_114] : memref<64x128xf32, #tpu.memory_space<vmem>>, vector<8x128xf32>
    tpu.vector_store %arg14[%c8_113, %c0_114], %317 {strides = array<i32>} : memref<64x128xf32, #tpu.memory_space<vmem>>, vector<8x128xf32>,
    %c16_115 = arith.constant 16 : index
    %c0_116 = arith.constant 0 : index
    %319 = vector.load %arg13[%c16_115, %c0_116] : memref<64x128xf32, #tpu.memory_space<vmem>>, vector<8x128xf32>
    %c40_117 = arith.constant 40 : index
    %c0_118 = arith.constant 0 : index
    %320 = vector.load %arg13[%c40_117, %c0_118] : memref<64x128xf32, #tpu.memory_space<vmem>>, vector<8x128xf32>
    %321 = arith.select %28, %319, %320 : vector<8x128xi1>, vector<8x128xf32>
    %c16_119 = arith.constant 16 : index
    %c0_120 = arith.constant 0 : index
    %322 = vector.load %arg14[%c16_119, %c0_120] : memref<64x128xf32, #tpu.memory_space<vmem>>, vector<8x128xf32>
    tpu.vector_store %arg14[%c16_119, %c0_120], %321 {strides = array<i32>} : memref<64x128xf32, #tpu.memory_space<vmem>>, vector<8x128xf32>,
    %c24_121 = arith.constant 24 : index
    %c0_122 = arith.constant 0 : index
    %323 = vector.load %arg13[%c24_121, %c0_122] : memref<64x128xf32, #tpu.memory_space<vmem>>, vector<8x128xf32>
    %c32_123 = arith.constant 32 : index
    %c0_124 = arith.constant 0 : index
    %324 = vector.load %arg13[%c32_123, %c0_124] : memref<64x128xf32, #tpu.memory_space<vmem>>, vector<8x128xf32>
    %325 = arith.select %28, %323, %324 : vector<8x128xi1>, vector<8x128xf32>
    %c24_125 = arith.constant 24 : index
    %c0_126 = arith.constant 0 : index
    %326 = vector.load %arg14[%c24_125, %c0_126] : memref<64x128xf32, #tpu.memory_space<vmem>>, vector<8x128xf32>
    tpu.vector_store %arg14[%c24_125, %c0_126], %325 {strides = array<i32>} : memref<64x128xf32, #tpu.memory_space<vmem>>, vector<8x128xf32>,
    %c32_127 = arith.constant 32 : index
    %c0_128 = arith.constant 0 : index
    %327 = vector.load %arg13[%c32_127, %c0_128] : memref<64x128xf32, #tpu.memory_space<vmem>>, vector<8x128xf32>
    %c24_129 = arith.constant 24 : index
    %c0_130 = arith.constant 0 : index
    %328 = vector.load %arg13[%c24_129, %c0_130] : memref<64x128xf32, #tpu.memory_space<vmem>>, vector<8x128xf32>
    %329 = arith.select %28, %327, %328 : vector<8x128xi1>, vector<8x128xf32>
    %c32_131 = arith.constant 32 : index
    %c0_132 = arith.constant 0 : index
    %330 = vector.load %arg14[%c32_131, %c0_132] : memref<64x128xf32, #tpu.memory_space<vmem>>, vector<8x128xf32>
    tpu.vector_store %arg14[%c32_131, %c0_132], %329 {strides = array<i32>} : memref<64x128xf32, #tpu.memory_space<vmem>>, vector<8x128xf32>,
    %c40_133 = arith.constant 40 : index
    %c0_134 = arith.constant 0 : index
    %331 = vector.load %arg13[%c40_133, %c0_134] : memref<64x128xf32, #tpu.memory_space<vmem>>, vector<8x128xf32>
    %c16_135 = arith.constant 16 : index
    %c0_136 = arith.constant 0 : index
    %332 = vector.load %arg13[%c16_135, %c0_136] : memref<64x128xf32, #tpu.memory_space<vmem>>, vector<8x128xf32>
    %333 = arith.select %28, %331, %332 : vector<8x128xi1>, vector<8x128xf32>
    %c40_137 = arith.constant 40 : index
    %c0_138 = arith.constant 0 : index
    %334 = vector.load %arg14[%c40_137, %c0_138] : memref<64x128xf32, #tpu.memory_space<vmem>>, vector<8x128xf32>
    tpu.vector_store %arg14[%c40_137, %c0_138], %333 {strides = array<i32>} : memref<64x128xf32, #tpu.memory_space<vmem>>, vector<8x128xf32>,
    %c48_139 = arith.constant 48 : index
    %c0_140 = arith.constant 0 : index
    %335 = vector.load %arg13[%c48_139, %c0_140] : memref<64x128xf32, #tpu.memory_space<vmem>>, vector<8x128xf32>
    %c8_141 = arith.constant 8 : index
    %c0_142 = arith.constant 0 : index
    %336 = vector.load %arg13[%c8_141, %c0_142] : memref<64x128xf32, #tpu.memory_space<vmem>>, vector<8x128xf32>
    %337 = arith.select %28, %335, %336 : vector<8x128xi1>, vector<8x128xf32>
    %c48_143 = arith.constant 48 : index
    %c0_144 = arith.constant 0 : index
    %338 = vector.load %arg14[%c48_143, %c0_144] : memref<64x128xf32, #tpu.memory_space<vmem>>, vector<8x128xf32>
    tpu.vector_store %arg14[%c48_143, %c0_144], %337 {strides = array<i32>} : memref<64x128xf32, #tpu.memory_space<vmem>>, vector<8x128xf32>,
    %c56_145 = arith.constant 56 : index
    %c0_146 = arith.constant 0 : index
    %339 = vector.load %arg13[%c56_145, %c0_146] : memref<64x128xf32, #tpu.memory_space<vmem>>, vector<8x128xf32>
    %c0_147 = arith.constant 0 : index
    %c0_148 = arith.constant 0 : index
    %340 = vector.load %arg13[%c0_147, %c0_148] : memref<64x128xf32, #tpu.memory_space<vmem>>, vector<8x128xf32>
    %341 = arith.select %28, %339, %340 : vector<8x128xi1>, vector<8x128xf32>
    %c56_149 = arith.constant 56 : index
    %c0_150 = arith.constant 0 : index
    %342 = vector.load %arg14[%c56_149, %c0_150] : memref<64x128xf32, #tpu.memory_space<vmem>>, vector<8x128xf32>
    tpu.vector_store %arg14[%c56_149, %c0_150], %341 {strides = array<i32>} : memref<64x128xf32, #tpu.memory_space<vmem>>, vector<8x128xf32>,
    %c0_151 = arith.constant 0 : index
    %c0_152 = arith.constant 0 : index
    %343 = vector.load %arg1[%c0_151, %c0_152] : memref<1x32xf32, #tpu.memory_space<vmem>>, vector<1x32xf32>
    %c0_153 = arith.constant 0 : index
    %c0_154 = arith.constant 0 : index
    %344 = vector.load %arg7[%c0_153, %c0_154] : memref<32x32xf32, #tpu.memory_space<vmem>>, vector<32x32xf32>
    %cst_155 = arith.constant dense<0.000000e+00> : vector<1x32xf32>
    %345 = tpu.matmul %343, %344, %cst_155 {dimension_numbers = #tpu.dot_dimension_numbers<[1], [0], [0], [1], [0, 0, 1, 1], [], []>} : vector<1x32xf32>, vector<32x32xf32>, vector<1x32xf32> -> vector<1x32xf32>
    %c0_156 = arith.constant 0 : index
    %c0_157 = arith.constant 0 : index
    %346 = vector.load %arg14[%c0_156, %c0_157] : memref<64x128xf32, #tpu.memory_space<vmem>>, vector<64x128xf32>
    %c0_158 = arith.constant 0 : index
    %c0_159 = arith.constant 0 : index
    %347 = vector.load %arg6[%c0_158, %c0_159] : memref<128x32xf32, #tpu.memory_space<vmem>>, vector<128x32xf32>
    %cst_160 = arith.constant dense<0.000000e+00> : vector<64x32xf32>
    %348 = tpu.matmul %346, %347, %cst_160 {dimension_numbers = #tpu.dot_dimension_numbers<[1], [0], [0], [1], [0, 0, 1, 1], [], []>} : vector<64x128xf32>, vector<128x32xf32>, vector<64x32xf32> -> vector<64x32xf32>
    %349 = vector.broadcast %345 : vector<1x32xf32> to vector<64x32xf32>
    %350 = arith.addf %348, %349 : vector<64x32xf32>
    %c0_161 = arith.constant 0 : index
    %c0_162 = arith.constant 0 : index
    %351 = vector.load %arg8[%c0_161, %c0_162] : memref<1x32xf32, #tpu.memory_space<vmem>>, vector<1x32xf32>
    %352 = vector.broadcast %351 : vector<1x32xf32> to vector<64x32xf32>
    %353 = arith.addf %350, %352 : vector<64x32xf32>
    %354 = math.tanh %353 : vector<64x32xf32>
    %c0_163 = arith.constant 0 : index
    %c0_164 = arith.constant 0 : index
    %355 = vector.load %arg9[%c0_163, %c0_164] : memref<1x32xf32, #tpu.memory_space<vmem>>, vector<1x32xf32>
    %356 = vector.broadcast %355 : vector<1x32xf32> to vector<64x32xf32>
    %357 = arith.mulf %354, %356 : vector<64x32xf32>
    %cst_165 = arith.constant dense<0.000000e+00> : vector<64xf32>
    %358 = vector.multi_reduction <add>, %357, %cst_165 [1] : vector<64x32xf32> to vector<64xf32>
    %359 = vector.shape_cast %358 : vector<64xf32> to vector<64x1xf32>
    %c0_166 = arith.constant 0 : index
    %c0_167 = arith.constant 0 : index
    %360 = vector.load %arg10[%c0_166, %c0_167] : memref<1x1xf32, #tpu.memory_space<vmem>>, vector<1x1xf32>
    %361 = vector.broadcast %360 : vector<1x1xf32> to vector<64x1xf32>
    %362 = arith.addf %359, %361 : vector<64x1xf32>
    %363 = vector.extract_strided_slice %362 {offsets = [0, 0], sizes = [8, 1], strides = [1, 1]} : vector<64x1xf32> to vector<8x1xf32>
    %364 = vector.extract_strided_slice %362 {offsets = [8, 0], sizes = [8, 1], strides = [1, 1]} : vector<64x1xf32> to vector<8x1xf32>
    %365 = vector.extract_strided_slice %362 {offsets = [16, 0], sizes = [8, 1], strides = [1, 1]} : vector<64x1xf32> to vector<8x1xf32>
    %366 = vector.extract_strided_slice %362 {offsets = [24, 0], sizes = [8, 1], strides = [1, 1]} : vector<64x1xf32> to vector<8x1xf32>
    %367 = vector.extract_strided_slice %362 {offsets = [32, 0], sizes = [8, 1], strides = [1, 1]} : vector<64x1xf32> to vector<8x1xf32>
    %368 = vector.extract_strided_slice %362 {offsets = [40, 0], sizes = [8, 1], strides = [1, 1]} : vector<64x1xf32> to vector<8x1xf32>
    %369 = vector.extract_strided_slice %362 {offsets = [48, 0], sizes = [8, 1], strides = [1, 1]} : vector<64x1xf32> to vector<8x1xf32>
    %370 = vector.extract_strided_slice %362 {offsets = [56, 0], sizes = [8, 1], strides = [1, 1]} : vector<64x1xf32> to vector<8x1xf32>
    %371 = arith.maximumf %363, %364 : vector<8x1xf32>
    %372 = arith.maximumf %371, %365 : vector<8x1xf32>
    %373 = arith.maximumf %372, %366 : vector<8x1xf32>
    %374 = arith.maximumf %373, %367 : vector<8x1xf32>
    %375 = arith.maximumf %374, %368 : vector<8x1xf32>
    %376 = arith.maximumf %375, %369 : vector<8x1xf32>
    %377 = arith.maximumf %376, %370 : vector<8x1xf32>
    %378 = arith.subf %363, %377 : vector<8x1xf32>
    %379 = math.exp %378 : vector<8x1xf32>
    %380 = arith.subf %364, %377 : vector<8x1xf32>
    %381 = math.exp %380 : vector<8x1xf32>
    %382 = arith.subf %365, %377 : vector<8x1xf32>
    %383 = math.exp %382 : vector<8x1xf32>
    %384 = arith.subf %366, %377 : vector<8x1xf32>
    %385 = math.exp %384 : vector<8x1xf32>
    %386 = arith.subf %367, %377 : vector<8x1xf32>
    %387 = math.exp %386 : vector<8x1xf32>
    %388 = arith.subf %368, %377 : vector<8x1xf32>
    %389 = math.exp %388 : vector<8x1xf32>
    %390 = arith.subf %369, %377 : vector<8x1xf32>
    %391 = math.exp %390 : vector<8x1xf32>
    %392 = arith.subf %370, %377 : vector<8x1xf32>
    %393 = math.exp %392 : vector<8x1xf32>
    %394 = arith.addf %379, %381 : vector<8x1xf32>
    %395 = arith.addf %394, %383 : vector<8x1xf32>
    %396 = arith.addf %395, %385 : vector<8x1xf32>
    %397 = arith.addf %396, %387 : vector<8x1xf32>
    %398 = arith.addf %397, %389 : vector<8x1xf32>
    %399 = arith.addf %398, %391 : vector<8x1xf32>
    %400 = arith.addf %399, %393 : vector<8x1xf32>
    %cst_168 = arith.constant 1.000000e+00 : f32
    %401 = vector.broadcast %cst_168 : f32 to vector<8x1xf32>
    %402 = arith.divf %401, %400 : vector<8x1xf32>
    %cst_169 = arith.constant 0.000000e+00 : f32
    %403 = vector.broadcast %cst_169 : f32 to vector<8x128xf32>
    %404 = arith.mulf %379, %402 : vector<8x1xf32>
    %c0_170 = arith.constant 0 : index
    %c0_171 = arith.constant 0 : index
    %405 = vector.load %arg14[%c0_170, %c0_171] : memref<64x128xf32, #tpu.memory_space<vmem>>, vector<8x128xf32>
    %406 = vector.broadcast %404 : vector<8x1xf32> to vector<8x128xf32>
    %407 = arith.mulf %406, %405 : vector<8x128xf32>
    %408 = arith.addf %403, %407 : vector<8x128xf32>
    %409 = arith.mulf %381, %402 : vector<8x1xf32>
    %c8_172 = arith.constant 8 : index
    %c0_173 = arith.constant 0 : index
    %410 = vector.load %arg14[%c8_172, %c0_173] : memref<64x128xf32, #tpu.memory_space<vmem>>, vector<8x128xf32>
    %411 = vector.broadcast %409 : vector<8x1xf32> to vector<8x128xf32>
    %412 = arith.mulf %411, %410 : vector<8x128xf32>
    %413 = arith.addf %408, %412 : vector<8x128xf32>
    %414 = arith.mulf %383, %402 : vector<8x1xf32>
    %c16_174 = arith.constant 16 : index
    %c0_175 = arith.constant 0 : index
    %415 = vector.load %arg14[%c16_174, %c0_175] : memref<64x128xf32, #tpu.memory_space<vmem>>, vector<8x128xf32>
    %416 = vector.broadcast %414 : vector<8x1xf32> to vector<8x128xf32>
    %417 = arith.mulf %416, %415 : vector<8x128xf32>
    %418 = arith.addf %413, %417 : vector<8x128xf32>
    %419 = arith.mulf %385, %402 : vector<8x1xf32>
    %c24_176 = arith.constant 24 : index
    %c0_177 = arith.constant 0 : index
    %420 = vector.load %arg14[%c24_176, %c0_177] : memref<64x128xf32, #tpu.memory_space<vmem>>, vector<8x128xf32>
    %421 = vector.broadcast %419 : vector<8x1xf32> to vector<8x128xf32>
    %422 = arith.mulf %421, %420 : vector<8x128xf32>
    %423 = arith.addf %418, %422 : vector<8x128xf32>
    %424 = arith.mulf %387, %402 : vector<8x1xf32>
    %c32_178 = arith.constant 32 : index
    %c0_179 = arith.constant 0 : index
    %425 = vector.load %arg14[%c32_178, %c0_179] : memref<64x128xf32, #tpu.memory_space<vmem>>, vector<8x128xf32>
    %426 = vector.broadcast %424 : vector<8x1xf32> to vector<8x128xf32>
    %427 = arith.mulf %426, %425 : vector<8x128xf32>
    %428 = arith.addf %423, %427 : vector<8x128xf32>
    %429 = arith.mulf %389, %402 : vector<8x1xf32>
    %c40_180 = arith.constant 40 : index
    %c0_181 = arith.constant 0 : index
    %430 = vector.load %arg14[%c40_180, %c0_181] : memref<64x128xf32, #tpu.memory_space<vmem>>, vector<8x128xf32>
    %431 = vector.broadcast %429 : vector<8x1xf32> to vector<8x128xf32>
    %432 = arith.mulf %431, %430 : vector<8x128xf32>
    %433 = arith.addf %428, %432 : vector<8x128xf32>
    %434 = arith.mulf %391, %402 : vector<8x1xf32>
    %c48_182 = arith.constant 48 : index
    %c0_183 = arith.constant 0 : index
    %435 = vector.load %arg14[%c48_182, %c0_183] : memref<64x128xf32, #tpu.memory_space<vmem>>, vector<8x128xf32>
    %436 = vector.broadcast %434 : vector<8x1xf32> to vector<8x128xf32>
    %437 = arith.mulf %436, %435 : vector<8x128xf32>
    %438 = arith.addf %433, %437 : vector<8x128xf32>
    %439 = arith.mulf %393, %402 : vector<8x1xf32>
    %c56_184 = arith.constant 56 : index
    %c0_185 = arith.constant 0 : index
    %440 = vector.load %arg14[%c56_184, %c0_185] : memref<64x128xf32, #tpu.memory_space<vmem>>, vector<8x128xf32>
    %441 = vector.broadcast %439 : vector<8x1xf32> to vector<8x128xf32>
    %442 = arith.mulf %441, %440 : vector<8x128xf32>
    %443 = arith.addf %438, %442 : vector<8x128xf32>
    %c0_186 = arith.constant 0 : index
    %c0_187 = arith.constant 0 : index
    %444 = vector.load %arg11[%c0_186, %c0_187] : memref<8x128xf32, #tpu.memory_space<vmem>>, vector<8x128xf32>
    tpu.vector_store %arg11[%c0_186, %c0_187], %443 {strides = array<i32>} : memref<8x128xf32, #tpu.memory_space<vmem>>, vector<8x128xf32>,
    return
  }
}

</mosaic_0001>

<bundles_post_ra>
// kernel: tpu_custom_call.1
= control target key start
LH: loop header
LB: loop body
LE: loop exit
PB: predicated region body
PF: predicated region fallthrough
CT: control target
= control target key end

     0   :  { %s5165_s0 = inlined_call_operand.vmem [shape: bf16[64,16], index: 0, kind: input, shape index: {}]   ;;  %s5166_s1 = inlined_call_operand.vmem [shape: f32[1,32], index: 1, kind: input, shape index: {}]   ;;  %s5167_s2 = inlined_call_operand.hbm [shape: bf16[16,384], index: 2, kind: input, shape index: {}]   ;;  %s5168_s3 = inlined_call_operand.vmem [shape: bf16[128,384], index: 3, kind: input, shape index: {}]   ;;  %s5169_s4 = inlined_call_operand.hbm [shape: f32[1,384], index: 4, kind: input, shape index: {}]   ;;  %s5170_s5 = inlined_call_operand.hbm [shape: f32[1,384], index: 5, kind: input, shape index: {}]   ;;  %s5171_s6 = inlined_call_operand.vmem [shape: f32[128,32], index: 6, kind: input, shape index: {}]   ;;  %s5172_s7 = inlined_call_operand.hbm [shape: f32[32,32], index: 7, kind: input, shape index: {}]   ;;  %s5173_s8 = inlined_call_operand.vmem [shape: f32[1,32], index: 8, kind: input, shape index: {}]   ;;  %s5174_s9 = inlined_call_operand.vmem [shape: f32[1,32], index: 9, kind: input, shape index: {}]   ;;  %s5175_s10 = inlined_call_operand.<no memory space> [shape: f32[1,1], index: 10, kind: input, shape index: {}]   ;;  %s5176_s11 = inlined_call_operand.hbm [shape: f32[8,128], index: 11, kind: output, shape index: {}]  }
   0x1   :  { %v16_v0 = vstv %s5175_s10 }
   0x2   :  { %17 = vst [vmem:[#allocation5] sm:$0x1] %v16_v0 }
   0x3   :  { %18 = vsyncpa [#allocation7], 0 }
   0x4   :  { %19 = vsyncpa [#allocation10], 0 }
   0x5   :  { %20 = vsyncpa [#allocation13], 0 }
   0x6   :  { %21 = vsyncpa [#allocation8], 0  ;;  %s3990_s19 = smov [#allocation9]   ;;  %s3991_s21 = smov [#allocation6]  }
   0x7   :  { %s46_s20 = sshll.u32 %s3990_s19, 4  ;;  %s31_s22 = sshll.u32 %s3991_s21, 4  ;;  %s47_s20 = int_to_ptr.vmem [resolvable:$true] %s46_s20  ;;  %s4066_s22 = int_to_ptr.vmem [resolvable:$true] %s31_s22 }
   0x8   :  { %s3872_s25 = scalar_lea.hbm %s5169_s4, 48 }
   0x9   :  { %p3873_p0 = scmp.ne.s32.totalorder %s5169_s4, %s3872_s25  ;;  %p3876_p1 = scmp.lt.u32.totalorder %s3872_s25, %s5169_s4 }
   0xb   :  { %p3878_p2 = pnand %p3876_p1, %p3873_p0 }
   0xd   :  { %3881 = shalt.err (!%p3878_p2)
}
   0xe   :  { %s3882_s29 = scalar_lea.vmem %s47_s20, 48  ;;  %s3886_s30 = scalar_lea.vmem %s47_s20, 64 }
   0xf   :  { %p3883_p3 = scmp.ne.s32.totalorder %s47_s20, %s3882_s29  ;;  %p3887_p4 = scmp.lt.s32.totalorder %s47_s20, %s47_s20 }
  0x10   :  { %p3888_p5 = scmp.lt.s32.totalorder %s3886_s30, %s3882_s29 }
  0x12   :  { %p3889_p6 = por %p3888_p5, %p3887_p4 }
  0x14   :  { %p3890_p7 = pnand %p3889_p6, %p3883_p3 }
  0x16   :  { %3893 = shalt.err (!%p3890_p7)
}
  0x17   :  { %49 = dma.hbm_to_vmem [thread:$0]  %s5169_s4, 48, %s47_s20, [#allocation10]  }
  0x18   :  { %s3894_s16 = scalar_lea.hbm %s5167_s2, 384 }
  0x19   :  { %p3895_p8 = scmp.ne.s32.totalorder %s5167_s2, %s3894_s16  ;;  %p3898_p9 = scmp.lt.u32.totalorder %s3894_s16, %s5167_s2 }
  0x1b   :  { %p3900_p10 = pnand %p3898_p9, %p3895_p8 }
  0x1d   :  { %3903 = shalt.err (!%p3900_p10)
}
  0x1e   :  { %s3904_s23 = scalar_lea.vmem %s4066_s22, 384  ;;  %p3909_p12 = scmp.lt.s32.totalorder %s4066_s22, %s4066_s22 }
  0x1f   :  { %p3905_p11 = scmp.ne.s32.totalorder %s4066_s22, %s3904_s23  ;;  %p3910_p13 = scmp.lt.s32.totalorder %s3904_s23, %s3904_s23 }
  0x21   :  { %p3911_p0 = por %p3910_p13, %p3909_p12 }
  0x23   :  { %p3912_p1 = pnand %p3911_p0, %p3905_p11 }
  0x25   :  { %3915 = shalt.err (!%p3912_p1)
}
  0x26   :  { %s3992_s4 = smov 192   ;;  %s3993_s20 = smov 12  }
  0x27   :  { %37 = dma.hbm_to_vmem [thread:$0]  %s5167_s2, 384, %s4066_s22, [#allocation7], %s3992_s4, %s3992_s4, %s3993_s20  }
  0x28   :  { %s3994_s26 = smov [#allocation11]   ;;  %s3995_s10 = smov [#allocation12]  }
  0x29   :  { %s56_s27 = sshll.u32 %s3994_s26, 4  ;;  %s67_s28 = sshll.u32 %s3995_s10, 4  ;;  %s57_s27 = int_to_ptr.vmem [resolvable:$true] %s56_s27  ;;  %s4097_s28 = int_to_ptr.vmem [resolvable:$true] %s67_s28 }
  0x2a   :  { %s3916_s12 = scalar_lea.hbm %s5170_s5, 48 }
  0x2b   :  { %p3917_p2 = scmp.ne.s32.totalorder %s5170_s5, %s3916_s12  ;;  %p3920_p3 = scmp.lt.u32.totalorder %s3916_s12, %s5170_s5 }
  0x2d   :  { %p3922_p4 = pnand %p3920_p3, %p3917_p2 }
  0x2f   :  { %3925 = shalt.err (!%p3922_p4)
}
  0x30   :  { %s3926_s2 = scalar_lea.vmem %s57_s27, 48  ;;  %s3930_s22 = scalar_lea.vmem %s57_s27, 64 }
  0x31   :  { %p3927_p5 = scmp.ne.s32.totalorder %s57_s27, %s3926_s2  ;;  %p3931_p6 = scmp.lt.s32.totalorder %s57_s27, %s57_s27 }
  0x32   :  { %p3932_p7 = scmp.lt.s32.totalorder %s3930_s22, %s3926_s2 }
  0x34   :  { %p3933_p8 = por %p3932_p7, %p3931_p6 }
  0x36   :  { %p3934_p9 = pnand %p3933_p8, %p3927_p5 }
  0x38   :  { %3937 = shalt.err (!%p3934_p9)
}
  0x39   :  { %59 = dma.hbm_to_vmem [thread:$0]  %s5170_s5, 48, %s57_s27, [#allocation10]  }
  0x3a   :  { %s3938_s23 = scalar_lea.hbm %s5172_s7, 512 }
  0x3b   :  { %p3939_p10 = scmp.ne.s32.totalorder %s5172_s7, %s3938_s23  ;;  %p3942_p11 = scmp.lt.u32.totalorder %s3938_s23, %s5172_s7 }
  0x3d   :  { %p3944_p12 = pnand %p3942_p11, %p3939_p10 }
  0x3f   :  { %3947 = shalt.err (!%p3944_p12)
}
  0x40   :  { %s3948_s26 = scalar_lea.vmem %s4097_s28, 512  ;;  %p3953_p0 = scmp.lt.s32.totalorder %s4097_s28, %s4097_s28 }
  0x41   :  { %p3949_p13 = scmp.ne.s32.totalorder %s4097_s28, %s3948_s26  ;;  %p3954_p1 = scmp.lt.s32.totalorder %s3948_s26, %s3948_s26 }
  0x43   :  { %p3955_p2 = por %p3954_p1, %p3953_p0 }
  0x45   :  { %p3956_p3 = pnand %p3955_p2, %p3949_p13 }
  0x47   :  { %3959 = shalt.err (!%p3956_p3)
}
  0x48   :  { %s3996_s5 = smov 128   ;;  %s3997_s27 = smov 8  }
  0x49   :  { %73 = dma.hbm_to_vmem [thread:$0]  %s5172_s7, 512, %s4097_s28, [#allocation13], %s3996_s5, %s3996_s5, %s3997_s27  }
  0x4a   :  { %3982 = dma.done.wait [#allocation7], 384  }
  0x4b   :  { %3983 = vsyncadd [#allocation7], 4294966912 }
  0x4c   :  { %3984 = dma.done.wait [#allocation10], 96  }
  0x4d   :  { %3985 = vsyncadd [#allocation10], 4294967200 }
  0x4e   :  { %3986 = dma.done.wait [#allocation13], 512  }
  0x4f   :  { %3987 = vsyncadd [#allocation13], 4294966784  ;;  %v5179_v1 = vmov 0   ;;  %v5177_v2 = vmov 0.0   ;;  %vm4000_vm0 = vmmov 0   ;;  %v3641_v5 = vld [vmem:[%s5165_s0] sm:$0xff]   ;;  %v107_v42 = vlaneseq }
  0x50   :  { %203 = vmatprep.mubr.bf16.mxu0 %v5179_v1  ;;  %3370 = vmatprep.subr.bf16.mxu1 %v5177_v2  ;;  %v3638_v3 = vld [vmem:[#allocation6 + $0x4] ss:$12 sps:$4 sm:$0xff]   ;;  %v3640_v4 = vld [vmem:[#allocation6] ss:$12 sps:$4 sm:$0xff]   ;;  %vm158_vm1 = vcmask 130048   ;;  %v3645_v13 = vld [vmem:[%s5165_s0 + $0x18] sm:$0xff]  }
  0x51   :  { %3386 = vmatprep.mubr.msk.bf16.mxu1 %vm4000_vm0, %v5177_v2  ;;  %3637 = vset.pattern.permute.xlu1 %v5179_v1  ;;  %v3642_v6 = vld [vmem:[#allocation6 + $0x8] ss:$12 sps:$4 sm:$0xff]   ;;  %v4142_v7 = vld [vmem:[%s5168_s3 + $0x4] ss:$12 sps:$4 sm:$0xff]   ;;  %v4340_v43 = vshrl.u32 %v107_v42, 7  ;;  %v4351_v55 = vand.u32 127, %v107_v42 }
  0x52   :  { %3636 = vset.pattern.permute.xlu0 %v5179_v1  ;;  %171 = vmatprep.subr.bf16.mxu0 %v3638_v3  ;;  %v3643_v8 = vld [vmem:[%s5165_s0 + $0x8] sm:$0xff]   ;;  %v3644_v10 = vld [vmem:[%s5165_s0 + $0x10] sm:$0xff]   ;;  %v3672_v12 = vld [vmem:[%s5168_s3 + $0x38] ss:$12 sps:$4 sm:$0xff]   ;;  %vm2614_vm5 = vcmask 261120  }
  0x53   :  { %172 = vmatpush1.bf16.msra.mxu0 %v3640_v4  ;;  %v3667_v9 = vld [vmem:[%s5168_s3 + $0x8] ss:$12 sps:$4 sm:$0xff]   ;;  %v3671_v11 = vld [vmem:[%s5168_s3 + $0x20] ss:$12 sps:$4 sm:$0xff]   ;;  %v3673_v14 = vld [vmem:[%s5168_s3 + $0x50] ss:$12 sps:$4 sm:$0xff]  }
  0x54   :  { %3360 = vmatprep.subr.bf16.mxu0 %v3642_v6  ;;  %3371 = vmatpush3.bf16.msra.mxu1 %v3667_v9  ;;  %v3674_v15 = vld [vmem:[%s5168_s3 + $0x68] ss:$12 sps:$4 sm:$0xff]   ;;  %v3675_v16 = vld [vmem:[%s5168_s3 + $0x80] ss:$12 sps:$4 sm:$0xff]   ;;  %v3676_v19 = vld [vmem:[%s5168_s3 + $0x98] ss:$12 sps:$4 sm:$0xff]  }
  0x55   :  { %3372 = vmatprep.subr.bf16.mxu1 %v5177_v2  ;;  %v4185_v17 = vld [vmem:[%s5168_s3] ss:$12 sps:$4 sm:$0xff]   ;;  %v4190_v18 = vld [vmem:[%s5168_s3 + $0x1c] ss:$12 sps:$4 sm:$0xff]   ;;  %v4199_v20 = vld [vmem:[%s5168_s3 + $0x18] ss:$12 sps:$4 sm:$0xff]  }
  0x56   :  { %3034 = vmatmul.mubr.msk.bf16.vlgmr.msra.gmra.mrb[0].mxu0 %vm158_vm1, %v3641_v5  ;;  %v4205_v21 = vld [vmem:[%s5168_s3 + $0x34] ss:$12 sps:$4 sm:$0xff]   ;;  %v3677_v22 = vld [vmem:[%s5168_s3 + $0xb0] ss:$12 sps:$4 sm:$0xff]   ;;  %v4222_v24 = vld [vmem:[%s5168_s3 + $0x4c] ss:$12 sps:$4 sm:$0xff]  }
  0x57   :  { %3361 = vmatpush3.bf16.msra.mxu0 %v3642_v6  ;;  %213 = vmatprep.mubr.bf16.mxu0 %v5179_v1  ;;  %v4217_v23 = vld [vmem:[%s5168_s3 + $0x30] ss:$12 sps:$4 sm:$0xff]   ;;  %v4230_v25 = vld [vmem:[%s5168_s3 + $0x48] ss:$12 sps:$4 sm:$0xff]   ;;  %v4245_v27 = vld [vmem:[%s5168_s3 + $0x60] ss:$12 sps:$4 sm:$0xff]  }
  0x58   :  { %563 = vmatprep.subr.bf16.mxu0 %v4142_v7  ;;  %3373 = vmatpush3.bf16.msra.mxu1 %v3671_v11  ;;  %v4236_v26 = vld [vmem:[%s5168_s3 + $0x64] ss:$12 sps:$4 sm:$0xff]   ;;  %v4251_v28 = vld [vmem:[%s5168_s3 + $0x7c] ss:$12 sps:$4 sm:$0xff]   ;;  %v4265_v30 = vld [vmem:[%s5168_s3 + $0x94] ss:$12 sps:$4 sm:$0xff]  }
  0x59   :  { %3374 = vmatprep.subr.bf16.mxu1 %v5177_v2  ;;  %v4260_v29 = vld [vmem:[%s5168_s3 + $0x78] ss:$12 sps:$4 sm:$0xff]   ;;  %v4272_v31 = vld [vmem:[%s5168_s3 + $0x90] ss:$12 sps:$4 sm:$0xff]   ;;  %v4284_v33 = vld [vmem:[%s5168_s3 + $0xa8] ss:$12 sps:$4 sm:$0xff]  }
  0x5a   :  { %v4277_v32 = vld [vmem:[%s5168_s3 + $0xac] ss:$12 sps:$4 sm:$0xff]   ;;  %v3678_v34 = vld [vmem:[%s5168_s3 + $0x8] ss:$12 sps:$4 sm:$0xff]   ;;  %v3681_v37 = vld [vmem:[%s5168_s3 + $0x50] ss:$12 sps:$4 sm:$0xff]  }
  0x5b   :  { %v3679_v35 = vld [vmem:[%s5168_s3 + $0x20] ss:$12 sps:$4 sm:$0xff]   ;;  %v3680_v36 = vld [vmem:[%s5168_s3 + $0x38] ss:$12 sps:$4 sm:$0xff]   ;;  %v3682_v38 = vld [vmem:[%s5168_s3 + $0x68] ss:$12 sps:$4 sm:$0xff]  }
  0x5c   :  { %3375 = vmatpush3.bf16.msra.mxu1 %v3672_v12  ;;  %v3683_v39 = vld [vmem:[%s5168_s3 + $0x80] ss:$12 sps:$4 sm:$0xff]   ;;  %v3684_v40 = vld [vmem:[%s5168_s3 + $0x98] ss:$12 sps:$4 sm:$0xff]   ;;  %v3685_v41 = vld [vmem:[%s5168_s3 + $0xb0] ss:$12 sps:$4 sm:$0xff]  }
  0x5d   :  { %3376 = vmatprep.subr.bf16.mxu1 %v5177_v2  ;;  %v4343_v44 = vsub.s32 0, %v4340_v43  ;;  %v105_v45 = vld [vmem:[#allocation9] sm:$0x7]  ;;  %v113_v46 = vsub.s32 1, %v4340_v43  ;;  %5187 = vst [vmem:[#allocation20_spill] sm:$0xff] %v4351_v55  ;;  %v335_v59 = vadd.s32 128, %v4351_v55 }
  0x5e   :  { %3035 = vmatmul.mubr.msk.bf16.gmra.mrb[4].mxu0 %vm158_vm1, %v3643_v8  ;;  %vm373_vm2 = vcmp.lt.s32.totalorder %v4351_v55, 16 }
  0x5f   :  { %223 = vmatprep.mubr.bf16.mxu0 %v5179_v1  ;;  %5186 = vst [vmem:[#allocation19_spill] sm:$0xff] %v4343_v44  ;;  %v110_v48 = vrot.slane %v105_v45, %v4343_v44  ;;  %v114_v50 = vrot.slane %v105_v45, %v113_v46  ;;  %v348_v3 = vand.u32 127, %v335_v59 }
  0x60   :  { %3377 = vmatpush3.bf16.msra.mxu1 %v3673_v14 }
  0x61   :  { %3378 = vmatprep.subr.bf16.mxu1 %v5177_v2  ;;  %vm4359_vm3 = vcmp.lt.s32.totalorder %v348_v3, 16 }
  0x64   :  { %3379 = vmatpush3.bf16.msra.mxu1 %v3674_v15 }
  0x65   :  { %3380 = vmatprep.subr.bf16.mxu1 %v5177_v2 }
  0x66   :  { %3036 = vmatmul.mubr.msk.bf16.gmra.mrb[8].mxu0 %vm158_vm1, %v3644_v10 }
  0x67   :  { %233 = vmatprep.mubr.bf16.mxu0 %v5179_v1 }
  0x68   :  { %3381 = vmatpush3.bf16.msra.mxu1 %v3675_v16 }
  0x69   :  { %3382 = vmatprep.subr.bf16.mxu1 %v5177_v2 }
  0x6c   :  { %3383 = vmatpush3.bf16.msra.mxu1 %v3676_v19 }
  0x6d   :  { %3384 = vmatprep.subr.bf16.mxu1 %v5177_v2 }
  0x6e   :  { %3037 = vmatmul.mubr.msk.bf16.gmra.mrb[12].mxu0 %vm158_vm1, %v3645_v13 }
  0x6f   :  { %3362 = vmatprep.mubr.msk.bf16.mxu0 %vm158_vm1, %v3641_v5 }
  0x70   :  { %3385 = vmatpush3.bf16.msra.mxu1 %v3677_v22 }
  0x71   :  { %3390 = vmatprep.subr.bf16.mxu1 %v5177_v2 }
  0x73   :  { %3387 = vmatmul.mubr.bf16.vlgmr.msra.gmra.mrb[0].mxu1 %v5179_v1 }
  0x74   :  { %3406 = vmatprep.mubr.msk.bf16.mxu1 %vm4000_vm0, %v5177_v2  ;;  %3391 = vmatpush3.bf16.msra.mxu1 %v3678_v34 }
  0x75   :  { %3392 = vmatprep.subr.bf16.mxu1 %v5177_v2 }
  0x76   :  { %3363 = vmatmul.mubr.msk.bf16.vlgmr.msra.gmra.mrb[16].mxu0 %vm158_vm1, %v3643_v8 }
  0x77   :  { %564 = vmatpush1.bf16.msra.mxu0 %v4185_v17  ;;  %3366 = vmatprep.mubr.msk.bf16.mxu0 %vm158_vm1, %v3644_v10 }
  0x78   :  { %565 = vmatprep.subr.bf16.mxu0 %v4190_v18  ;;  %3393 = vmatpush3.bf16.msra.mxu1 %v3679_v35 }
  0x79   :  { %3394 = vmatprep.subr.bf16.mxu1 %v5177_v2 }
  0x7b   :  { %566 = vmatpush1.bf16.msra.mxu0 %v4199_v20 }
  0x7c   :  { %567 = vmatprep.subr.bf16.mxu0 %v4205_v21  ;;  %3395 = vmatpush3.bf16.msra.mxu1 %v3680_v36 }
  0x7d   :  { %3396 = vmatprep.subr.bf16.mxu1 %v5177_v2 }
  0x7e   :  { %3367 = vmatmul.mubr.msk.bf16.gmra.mrb[20].mxu0 %vm158_vm1, %v3645_v13 }
  0x7f   :  { %568 = vmatpush1.bf16.msra.mxu0 %v4217_v23  ;;  %595 = vmatprep.mubr.bf16.mxu0 %v5179_v1 }
  0x80   :  { %569 = vmatprep.subr.bf16.mxu0 %v4222_v24  ;;  %3397 = vmatpush3.bf16.msra.mxu1 %v3681_v37 }
  0x81   :  { %3398 = vmatprep.subr.bf16.mxu1 %v5177_v2 }
  0x83   :  { %570 = vmatpush1.bf16.msra.mxu0 %v4230_v25 }
  0x84   :  { %571 = vmatprep.subr.bf16.mxu0 %v4236_v26  ;;  %3399 = vmatpush3.bf16.msra.mxu1 %v3682_v38 }
  0x85   :  { %3400 = vmatprep.subr.bf16.mxu1 %v5177_v2 }
  0x87   :  { %572 = vmatpush1.bf16.msra.mxu0 %v4245_v27 }
  0x88   :  { %573 = vmatprep.subr.bf16.mxu0 %v4251_v28  ;;  %3401 = vmatpush3.bf16.msra.mxu1 %v3683_v39 }
  0x89   :  { %3402 = vmatprep.subr.bf16.mxu1 %v5177_v2 }
  0x8b   :  { %574 = vmatpush1.bf16.msra.mxu0 %v4260_v29 }
  0x8c   :  { %575 = vmatprep.subr.bf16.mxu0 %v4265_v30  ;;  %3403 = vmatpush3.bf16.msra.mxu1 %v3684_v40  ;;  %v5181_v40 = vsub.s32 2, %v4340_v43 }
  0x8d   :  { %3404 = vmatprep.subr.bf16.mxu1 %v5177_v2 }
  0x8f   :  { %576 = vmatpush1.bf16.msra.mxu0 %v4272_v31 }
  0x90   :  { %577 = vmatprep.subr.bf16.mxu0 %v4277_v32  ;;  %3405 = vmatpush3.bf16.msra.mxu1 %v3685_v41 }
  0x91   :  { %3410 = vmatprep.subr.bf16.mxu1 %v5177_v2 }
  0x93   :  { %578 = vmatpush1.bf16.msra.mxu0 %v4284_v33 }
  0x94   :  { %836 = vmatprep.subr.bf16.mxu0 %v4142_v7 }
  0x96   :  { %596 = vmatmul.mubr.bf16.vlgmr.msra.gmra.mrb[24].mxu0 %v5179_v1 }
  0x97   :  { %837 = vmatpush1.bf16.msra.mxu0 %v4185_v17  ;;  %868 = vmatprep.mubr.bf16.mxu0 %v5179_v1 }
  0x98   :  { %838 = vmatprep.subr.bf16.mxu0 %v4190_v18 }
  0x9b   :  { %839 = vmatpush1.bf16.msra.mxu0 %v4199_v20 }
  0x9c   :  { %840 = vmatprep.subr.bf16.mxu0 %v4205_v21 }
  0x9f   :  { %841 = vmatpush1.bf16.msra.mxu0 %v4217_v23 }
  0xa0   :  { %842 = vmatprep.subr.bf16.mxu0 %v4222_v24 }
  0xa3   :  { %843 = vmatpush1.bf16.msra.mxu0 %v4230_v25 }
  0xa4   :  { %844 = vmatprep.subr.bf16.mxu0 %v4236_v26 }
  0xa7   :  { %845 = vmatpush1.bf16.msra.mxu0 %v4245_v27 }
  0xa8   :  { %846 = vmatprep.subr.bf16.mxu0 %v4251_v28 }
  0xab   :  { %847 = vmatpush1.bf16.msra.mxu0 %v4260_v29 }
  0xac   :  { %848 = vmatprep.subr.bf16.mxu0 %v4265_v30 }
  0xaf   :  { %849 = vmatpush1.bf16.msra.mxu0 %v4272_v31 }
  0xb0   :  { %850 = vmatprep.subr.bf16.mxu0 %v4277_v32 }
  0xb3   :  { %851 = vmatpush1.bf16.msra.mxu0 %v4284_v33 }
  0xb4   :  { %1109 = vmatprep.subr.bf16.mxu0 %v4142_v7 }
 0x129   :  { %v205_v47 = vpop.f32.mrb[0].mxu0 }
 0x12a   :  { %v207_v49 = vpop.f32.mrb[1].mxu0 }
 0x12b   :  { %v209_v51 = vpop.f32.mrb[2].mxu0  ;;  %v4410_v59 = vadd.f32 %v207_v49, %v114_v50 }
 0x12c   :  { %v210_v52 = vadd.f32 %v209_v51, %v110_v48  ;;  %v211_v53 = vpop.f32.mrb[3].mxu0  ;;  %v206_v51 = vadd.f32 %v205_v47, %v110_v48 }
 0x12d   :  { %v4349_v54 = vadd.f32 %v211_v53, %v114_v50 }
 0x131   :  { %v215_v56 = vpop.f32.mrb[4].mxu0 }
 0x132   :  { %v216_v57 = vadd.f32 %v215_v56, %v110_v48  ;;  %v217_v58 = vpop.f32.mrb[5].mxu0 }
 0x133   :  { %v4354_v60 = vadd.f32 %v217_v58, %v114_v50  ;;  %v219_v61 = vpop.f32.mrb[6].mxu0 }
 0x134   :  { %v220_v62 = vadd.f32 %v219_v61, %v110_v48  ;;  %v221_v63 = vpop.f32.mrb[7].mxu0 }
 0x135   :  { %v4356_v0 = vadd.f32 %v221_v63, %v114_v50 }
 0x139   :  { %v225_v4 = vpop.f32.mrb[8].mxu0 }
 0x13a   :  { %v226_v5 = vadd.f32 %v225_v4, %v110_v48  ;;  %v227_v6 = vpop.f32.mrb[9].mxu0 }
 0x13b   :  { %v4363_v9 = vadd.f32 %v227_v6, %v114_v50  ;;  %v229_v10 = vpop.f32.mrb[10].mxu0 }
 0x13c   :  { %v230_v11 = vadd.f32 %v229_v10, %v110_v48  ;;  %v231_v12 = vpop.f32.mrb[11].mxu0  ;;  %v4367_v13 = vsel %vm373_vm2, %v220_v62, %v226_v5  ;;  %v4371_v14 = vsel %vm373_vm2, %v226_v5, %v220_v62 }
 0x13d   :  { %v4373_v15 = vadd.f32 %v231_v12, %v114_v50 }
 0x13e   :  { %v4385_v22 = vsel %vm373_vm2, %v216_v57, %v230_v11  ;;  %v4389_v34 = vsel %vm373_vm2, %v230_v11, %v216_v57 }
 0x141   :  { %v235_v37 = vpop.f32.mrb[12].mxu0 }
 0x142   :  { %v236_v38 = vadd.f32 %v235_v37, %v110_v48  ;;  %v237_v39 = vpop.f32.mrb[13].mxu0 }
 0x143   :  { %v4400_v41 = vadd.f32 %v237_v39, %v114_v50  ;;  %v239_v42 = vpop.f32.mrb[14].mxu0 }
 0x144   :  { %v240_v53 = vadd.f32 %v239_v42, %v110_v48  ;;  %v241_v56 = vpop.f32.mrb[15].mxu0  ;;  %v4404_v57 = vsel %vm373_vm2, %v210_v52, %v236_v38  ;;  %v4408_v58 = vsel %vm373_vm2, %v236_v38, %v210_v52  ;;  %v118_v48 = vrot.slane %v105_v45, %v5181_v40 }
 0x145   :  { %v4412_v61 = vadd.f32 %v241_v56, %v114_v50  ;;  %v336_v45 = vadd.s32 256, %v4351_v55 }
 0x146   :  { %v384_v52 = vsel %vm373_vm2, %v206_v51, %v240_v53  ;;  %v4428_v49 = vsel %vm373_vm2, %v240_v53, %v206_v51 }
 0x147   :  { %v385_v50 = vsel %vm4359_vm3, %v4410_v59, %v4412_v61  ;;  %v355_v37 = vand.u32 127, %v336_v45 }
 0x149   :  { %v3364_v3 = vpop.f32.mrb[16].mxu0  ;;  %vm4445_vm4 = vcmp.lt.s32.totalorder %v355_v37, 16 }
 0x14a   :  { %v4439_v4 = vadd.f32 %v3364_v3, %v118_v48  ;;  %v278_v5 = vpop.f32.mrb[17].mxu0 }
 0x14b   :  { %v3365_v6 = vpop.f32.mrb[18].mxu0  ;;  %v4453_v3 = vadd.f32 %v278_v5, %v118_v48 }
 0x14c   :  { %v4441_v10 = vadd.f32 %v3365_v6, %v118_v48  ;;  %v281_v11 = vpop.f32.mrb[19].mxu0 }
 0x14d   :  { %v4443_v12 = vadd.f32 %v281_v11, %v118_v48  ;;  %5192 = vst [vmem:[#allocation21_spill] sm:$0xff] %v4453_v3 }
 0x151   :  { %v3368_v38 = vpop.f32.mrb[20].mxu0 }
 0x152   :  { %v4449_v42 = vadd.f32 %v3368_v38, %v118_v48  ;;  %v294_v51 = vpop.f32.mrb[21].mxu0  ;;  %v638_v38 = vpop.f32.mrb[0].mxu1 }
 0x153   :  { %v4451_v53 = vadd.f32 %v294_v51, %v118_v48  ;;  %v3369_v56 = vpop.f32.mrb[22].mxu0  ;;  %v3388_v47 = vpop.f32.mrb[1].mxu1 }
 0x154   :  { %v4463_v11 = vadd.f32 %v3369_v56, %v118_v48  ;;  %v297_v37 = vpop.f32.mrb[23].mxu0  ;;  %v641_v36 = vpop.f32.mrb[2].mxu1  ;;  %v5209_v8 = vld [vmem:[#allocation21_spill] sm:$0xff] }
 0x155   :  { %v4473_v63 = vadd.f32 %v297_v37, %v118_v48  ;;  %v3389_v48 = vpop.f32.mrb[3].mxu1  ;;  %v377_v37 = vld [vmem:[#allocation11] sm:$0x7] }
 0x156   :  { %v386_v56 = vsel %vm4445_vm4, %v4453_v3, %v4463_v11  ;;  %v4492_v51 = vrot.slane %v377_v37, %v4343_v44  ;;  %v4496_v5 = vrot.slane %v377_v37, %v113_v46  ;;  %v5193_v46 = vsub.s32 2, %v4340_v43 }
 0x158   :  { %v4502_v44 = vrot.slane %v377_v37, %v5193_v46  ;;  %v3692_v37 = vld [vmem:[%s5168_s3 + $0x98] ss:$12 sps:$4 sm:$0xff]  }
 0x15a   :  { %v639_v3 = vadd.f32 %v638_v38, %v4502_v44  ;;  %v3688_v38 = vld [vmem:[%s5168_s3 + $0x38] ss:$12 sps:$4 sm:$0xff]  }
 0x169   :  { %v597_v36 = vpop.f32.mrb[24].mxu0 }
 0x16a   :  { %v598_v45 = vadd.f32 %v597_v36, %v4492_v51  ;;  %v599_v16 = vpop.f32.mrb[25].mxu0 }
 0x16b   :  { %v600_v19 = vadd.f32 %v599_v16, %v4496_v5  ;;  %v601_v35 = vpop.f32.mrb[26].mxu0 }
 0x16c   :  { %v644_v6 = vadd.f32 %v598_v45, %v384_v52  ;;  %v602_v62 = vpop.f32.mrb[27].mxu0  ;;  %v3687_v45 = vld [vmem:[%s5168_s3 + $0x20] ss:$12 sps:$4 sm:$0xff]  }
 0x16d   :  { %v651_v2 = vadd.f32 %v600_v19, %v385_v50 }
 0x16e   :  { %v3066_v47 = vmul.f32 -1.442695, %v644_v6 }
 0x16f   :  { %v3067_v48 = vmul.f32 -1.442695, %v651_v2 }
 0x170   :  { %3758 = vpow2.f32 %v3066_v47  ;;  %v3691_v47 = vld [vmem:[%s5168_s3 + $0x80] ss:$12 sps:$4 sm:$0xff]  }
 0x171   :  { %3760 = vpow2.f32 %v3067_v48  ;;  %v3693_v48 = vld [vmem:[%s5168_s3 + $0xb0] ss:$12 sps:$4 sm:$0xff]  }
 0x17a   :  { %v3759_v1 = vpop.eup %3758 }
 0x17b   :  { %v648_v40 = vadd.f32 1.0, %v3759_v1  ;;  %v3761_v55 = vpop.eup %3760 }
 0x17c   :  { %v655_v36 = vadd.f32 1.0, %v3761_v55  ;;  %v5194_v55 = vmov 0  }
 0x17d   :  { %3762 = vrcp.f32 %v648_v40  ;;  %v5195_v40 = vmov 0.0  }
 0x17e   :  { %3764 = vrcp.f32 %v655_v36 }
 0x187   :  { %v3763_v16 = vpop.eup %3762 }
 0x188   :  { %v658_v35 = vmul.f32 %v3763_v16, %v639_v3  ;;  %v3765_v19 = vpop.eup %3764  ;;  %v3686_v3 = vld [vmem:[%s5168_s3 + $0x8] ss:$12 sps:$4 sm:$0xff]  }
 0x189   :  { %v661_v52 = vsub.f32 1.0, %v3765_v19  ;;  %v663_v6 = vmul.f32 0.0, %v3765_v19 }
 0x18a   :  { %v659_v62 = vadd.f32 %v658_v35, %v386_v56  ;;  %v3690_v56 = vld [vmem:[%s5168_s3 + $0x68] ss:$12 sps:$4 sm:$0xff]  }
 0x18c   :  { %3766 = vtanh.f32 %v659_v62 }
 0x196   :  { %v3767_v2 = vpop.eup %3766 }
 0x197   :  { %v662_v50 = vmul.f32 %v3767_v2, %v661_v52 }
 0x199   :  { %v4505_v1 = vadd.f32 %v663_v6, %v662_v50 }
 0x19b   :  { %v675_v43 = vpack.c.bf16 %v4505_v1, %v4505_v1 }
 0x19d   :  { %869 = vmatmul.mubr.bf16.vlgmr.msra.gmra.mrb[28].mxu0 %v675_v43  ;;  %3407 = vmatmul.mubr.bf16.vlgmr.msra.gmra.mrb[4].mxu1 %v675_v43 }
 0x19e   :  { %1110 = vmatpush1.bf16.msra.mxu0 %v4185_v17  ;;  %1141 = vmatprep.mubr.bf16.mxu0 %v5194_v55 }
 0x19f   :  { %1111 = vmatprep.subr.bf16.mxu0 %v4190_v18  ;;  %3426 = vmatprep.mubr.msk.bf16.mxu1 %vm4000_vm0, %v5195_v40 }
 0x1a0   :  { %3411 = vmatpush3.bf16.msra.mxu1 %v3686_v3  ;;  %v5196_v3 = vsel %vm4359_vm3, %v4349_v54, %v4400_v41 }
 0x1a1   :  { %3412 = vmatprep.subr.bf16.mxu1 %v5195_v40 }
 0x1a2   :  { %1112 = vmatpush1.bf16.msra.mxu0 %v4199_v20 }
 0x1a3   :  { %1113 = vmatprep.subr.bf16.mxu0 %v4205_v21 }
 0x1a4   :  { %3413 = vmatpush3.bf16.msra.mxu1 %v3687_v45 }
 0x1a5   :  { %3414 = vmatprep.subr.bf16.mxu1 %v5195_v40 }
 0x1a6   :  { %1114 = vmatpush1.bf16.msra.mxu0 %v4217_v23 }
 0x1a7   :  { %1115 = vmatprep.subr.bf16.mxu0 %v4222_v24 }
 0x1a8   :  { %3415 = vmatpush3.bf16.msra.mxu1 %v3688_v38 }
 0x1a9   :  { %3416 = vmatprep.subr.bf16.mxu1 %v5195_v40 }
 0x1aa   :  { %1116 = vmatpush1.bf16.msra.mxu0 %v4230_v25 }
 0x1ab   :  { %1117 = vmatprep.subr.bf16.mxu0 %v4236_v26 }
 0x1ae   :  { %1118 = vmatpush1.bf16.msra.mxu0 %v4245_v27 }
 0x1af   :  { %1119 = vmatprep.subr.bf16.mxu0 %v4251_v28 }
 0x1b2   :  { %1120 = vmatpush1.bf16.msra.mxu0 %v4260_v29 }
 0x1b3   :  { %1121 = vmatprep.subr.bf16.mxu0 %v4265_v30 }
 0x1b6   :  { %1122 = vmatpush1.bf16.msra.mxu0 %v4272_v31 }
 0x1b7   :  { %1123 = vmatprep.subr.bf16.mxu0 %v4277_v32 }
 0x1ba   :  { %1124 = vmatpush1.bf16.msra.mxu0 %v4284_v33 }
 0x1bb   :  { %1382 = vmatprep.subr.bf16.mxu0 %v4142_v7  ;;  %v3689_v7 = vld [vmem:[%s5168_s3 + $0x50] ss:$12 sps:$4 sm:$0xff]  }
 0x1bc   :  { %3417 = vmatpush3.bf16.msra.mxu1 %v3689_v7 }
 0x1bd   :  { %3418 = vmatprep.subr.bf16.mxu1 %v5195_v40 }
 0x1c0   :  { %3419 = vmatpush3.bf16.msra.mxu1 %v3690_v56 }
 0x1c1   :  { %3420 = vmatprep.subr.bf16.mxu1 %v5195_v40 }
 0x1c4   :  { %3421 = vmatpush3.bf16.msra.mxu1 %v3691_v47 }
 0x1c5   :  { %3422 = vmatprep.subr.bf16.mxu1 %v5195_v40 }
 0x1c8   :  { %3423 = vmatpush3.bf16.msra.mxu1 %v3692_v37 }
 0x1c9   :  { %3424 = vmatprep.subr.bf16.mxu1 %v5195_v40 }
 0x1cc   :  { %3425 = vmatpush3.bf16.msra.mxu1 %v3693_v48 }
 0x1cd   :  { %3430 = vmatprep.subr.bf16.mxu1 %v5195_v40 }
 0x270   :  { %v870_v46 = vpop.f32.mrb[28].mxu0  ;;  %v911_v36 = vpop.f32.mrb[4].mxu1 }
 0x271   :  { %v871_v16 = vadd.f32 %v870_v46, %v4492_v51  ;;  %v872_v35 = vpop.f32.mrb[29].mxu0  ;;  %v3408_v62 = vpop.f32.mrb[5].mxu1  ;;  %v912_v46 = vadd.f32 %v911_v36, %v4502_v44 }
 0x272   :  { %v873_v19 = vadd.f32 %v872_v35, %v4496_v5  ;;  %v874_v52 = vpop.f32.mrb[30].mxu0  ;;  %v914_v2 = vpop.f32.mrb[6].mxu1  ;;  %v5197_v35 = vsel %vm4445_vm4, %v4443_v12, %v4449_v42 }
 0x273   :  { %v917_v50 = vadd.f32 %v871_v16, %v4404_v57  ;;  %v875_v6 = vpop.f32.mrb[31].mxu0  ;;  %v3409_v43 = vpop.f32.mrb[7].mxu1 }
 0x274   :  { %v924_v45 = vadd.f32 %v873_v19, %v5196_v3 }
 0x275   :  { %v3092_v38 = vmul.f32 -1.442695, %v917_v50 }
 0x276   :  { %v3093_v7 = vmul.f32 -1.442695, %v924_v45 }
 0x277   :  { %3768 = vpow2.f32 %v3092_v38 }
 0x278   :  { %3770 = vpow2.f32 %v3093_v7 }
 0x281   :  { %v3769_v56 = vpop.eup %3768 }
 0x282   :  { %v921_v47 = vadd.f32 1.0, %v3769_v56  ;;  %v3771_v37 = vpop.eup %3770  ;;  %v5198_v56 = vsel %vm4359_vm3, %v4354_v60, %v4373_v15 }
 0x283   :  { %v928_v48 = vadd.f32 1.0, %v3771_v37 }
 0x284   :  { %3772 = vrcp.f32 %v921_v47 }
 0x285   :  { %3774 = vrcp.f32 %v928_v48 }
 0x28e   :  { %v3773_v57 = vpop.eup %3772 }
 0x28f   :  { %v931_v16 = vmul.f32 %v3773_v57, %v912_v46  ;;  %v3775_v19 = vpop.eup %3774 }
 0x290   :  { %v934_v52 = vsub.f32 1.0, %v3775_v19  ;;  %v936_v6 = vmul.f32 %v3775_v19, %v4505_v1 }
 0x291   :  { %v932_v62 = vadd.f32 %v931_v16, %v5197_v35 }
 0x293   :  { %3776 = vtanh.f32 %v932_v62 }
 0x29d   :  { %v3777_v2 = vpop.eup %3776 }
 0x29e   :  { %v935_v50 = vmul.f32 %v3777_v2, %v934_v52  ;;  %v5199_v52 = vsel %vm4445_vm4, %v4439_v4, %v4473_v63 }
 0x2a0   :  { %v4575_v43 = vadd.f32 %v936_v6, %v935_v50 }
 0x2a2   :  { %v948_v36 = vpack.c.bf16 %v4575_v43, %v4575_v43 }
 0x2a4   :  { %1142 = vmatmul.mubr.bf16.vlgmr.msra.gmra.mrb[32].mxu0 %v948_v36  ;;  %3427 = vmatmul.mubr.bf16.vlgmr.msra.gmra.mrb[8].mxu1 %v948_v36 }
 0x2a5   :  { %1383 = vmatpush1.bf16.msra.mxu0 %v4185_v17  ;;  %1414 = vmatprep.mubr.bf16.mxu0 %v5194_v55  ;;  %v3694_v17 = vld [vmem:[%s5168_s3 + $0x8] ss:$12 sps:$4 sm:$0xff]  }
 0x2a6   :  { %1384 = vmatprep.subr.bf16.mxu0 %v4190_v18  ;;  %3446 = vmatprep.mubr.msk.bf16.mxu1 %vm4000_vm0, %v5195_v40  ;;  %v3695_v18 = vld [vmem:[%s5168_s3 + $0x20] ss:$12 sps:$4 sm:$0xff]  }
 0x2a7   :  { %3431 = vmatpush3.bf16.msra.mxu1 %v3694_v17 }
 0x2a8   :  { %3432 = vmatprep.subr.bf16.mxu1 %v5195_v40 }
 0x2a9   :  { %1385 = vmatpush1.bf16.msra.mxu0 %v4199_v20  ;;  %v3696_v20 = vld [vmem:[%s5168_s3 + $0x38] ss:$12 sps:$4 sm:$0xff]  }
 0x2aa   :  { %1386 = vmatprep.subr.bf16.mxu0 %v4205_v21  ;;  %v3697_v21 = vld [vmem:[%s5168_s3 + $0x50] ss:$12 sps:$4 sm:$0xff]  }
 0x2ab   :  { %3433 = vmatpush3.bf16.msra.mxu1 %v3695_v18 }
 0x2ac   :  { %3434 = vmatprep.subr.bf16.mxu1 %v5195_v40 }
 0x2ad   :  { %1387 = vmatpush1.bf16.msra.mxu0 %v4217_v23  ;;  %v3698_v23 = vld [vmem:[%s5168_s3 + $0x68] ss:$12 sps:$4 sm:$0xff]  }
 0x2ae   :  { %1388 = vmatprep.subr.bf16.mxu0 %v4222_v24  ;;  %v3699_v24 = vld [vmem:[%s5168_s3 + $0x80] ss:$12 sps:$4 sm:$0xff]  }
 0x2af   :  { %3435 = vmatpush3.bf16.msra.mxu1 %v3696_v20 }
 0x2b0   :  { %3436 = vmatprep.subr.bf16.mxu1 %v5195_v40 }
 0x2b1   :  { %1389 = vmatpush1.bf16.msra.mxu0 %v4230_v25  ;;  %v3700_v25 = vld [vmem:[%s5168_s3 + $0x98] ss:$12 sps:$4 sm:$0xff]  }
 0x2b2   :  { %1390 = vmatprep.subr.bf16.mxu0 %v4236_v26  ;;  %v3701_v26 = vld [vmem:[%s5168_s3 + $0xb0] ss:$12 sps:$4 sm:$0xff]  }
 0x2b3   :  { %3437 = vmatpush3.bf16.msra.mxu1 %v3697_v21 }
 0x2b4   :  { %3438 = vmatprep.subr.bf16.mxu1 %v5195_v40 }
 0x2b5   :  { %1391 = vmatpush1.bf16.msra.mxu0 %v4245_v27 }
 0x2b6   :  { %1392 = vmatprep.subr.bf16.mxu0 %v4251_v28 }
 0x2b7   :  { %3439 = vmatpush3.bf16.msra.mxu1 %v3698_v23  ;;  %v4654_v23 = vld [vmem:[%s5168_s3 + $0x4] ss:$12 sps:$4 sm:$0xff]  }
 0x2b8   :  { %3440 = vmatprep.subr.bf16.mxu1 %v5195_v40 }
 0x2b9   :  { %1393 = vmatpush1.bf16.msra.mxu0 %v4260_v29 }
 0x2ba   :  { %1394 = vmatprep.subr.bf16.mxu0 %v4265_v30 }
 0x2bb   :  { %3441 = vmatpush3.bf16.msra.mxu1 %v3699_v24  ;;  %v4659_v24 = vld [vmem:[%s5168_s3] ss:$12 sps:$4 sm:$0xff]  }
 0x2bc   :  { %3442 = vmatprep.subr.bf16.mxu1 %v5195_v40 }
 0x2bd   :  { %1395 = vmatpush1.bf16.msra.mxu0 %v4272_v31 }
 0x2be   :  { %1396 = vmatprep.subr.bf16.mxu0 %v4277_v32 }
 0x2bf   :  { %3443 = vmatpush3.bf16.msra.mxu1 %v3700_v25  ;;  %v3705_v25 = vld [vmem:[%s5168_s3 + $0x8] ss:$12 sps:$4 sm:$0xff]  }
 0x2c0   :  { %3444 = vmatprep.subr.bf16.mxu1 %v5195_v40 }
 0x2c1   :  { %1397 = vmatpush1.bf16.msra.mxu0 %v4284_v33 }
 0x2c2   :  { %1655 = vmatprep.subr.bf16.mxu0 %v4654_v23 }
 0x2c3   :  { %3445 = vmatpush3.bf16.msra.mxu1 %v3701_v26  ;;  %v4669_v26 = vld [vmem:[%s5168_s3 + $0x1c] ss:$12 sps:$4 sm:$0xff]  }
 0x2c4   :  { %3450 = vmatprep.subr.bf16.mxu1 %v5195_v40 }
 0x377   :  { %v1143_v27 = vpop.f32.mrb[32].mxu0  ;;  %v1184_v28 = vpop.f32.mrb[8].mxu1 }
 0x378   :  { %v1144_v29 = vadd.f32 %v1143_v27, %v4492_v51  ;;  %v1145_v30 = vpop.f32.mrb[33].mxu0  ;;  %v3428_v31 = vpop.f32.mrb[9].mxu1  ;;  %v1185_v62 = vadd.f32 %v1184_v28, %v4502_v44  ;;  %v4675_v27 = vld [vmem:[%s5168_s3 + $0x18] ss:$12 sps:$4 sm:$0xff]   ;;  %v3709_v28 = vld [vmem:[%s5168_s3 + $0x20] ss:$12 sps:$4 sm:$0xff]  }
 0x379   :  { %v1146_v32 = vadd.f32 %v1145_v30, %v4496_v5  ;;  %v1147_v33 = vpop.f32.mrb[34].mxu0  ;;  %v1187_v3 = vpop.f32.mrb[10].mxu1  ;;  %v4691_v30 = vld [vmem:[%s5168_s3 + $0x30] ss:$12 sps:$4 sm:$0xff]   ;;  %v3713_v31 = vld [vmem:[%s5168_s3 + $0x38] ss:$12 sps:$4 sm:$0xff]  }
 0x37a   :  { %v1190_v45 = vadd.f32 %v1144_v29, %v4385_v22  ;;  %v1148_v38 = vpop.f32.mrb[35].mxu0  ;;  %v3429_v7 = vpop.f32.mrb[11].mxu1  ;;  %v4685_v29 = vld [vmem:[%s5168_s3 + $0x34] ss:$12 sps:$4 sm:$0xff]   ;;  %v3717_v3 = vld [vmem:[%s5168_s3 + $0x50] ss:$12 sps:$4 sm:$0xff]  }
 0x37b   :  { %v1197_v47 = vadd.f32 %v1146_v32, %v5198_v56  ;;  %v4701_v32 = vld [vmem:[%s5168_s3 + $0x4c] ss:$12 sps:$4 sm:$0xff]   ;;  %v4707_v33 = vld [vmem:[%s5168_s3 + $0x48] ss:$12 sps:$4 sm:$0xff]  }
 0x37c   :  { %v3118_v37 = vmul.f32 -1.442695, %v1190_v45  ;;  %v4717_v45 = vld [vmem:[%s5168_s3 + $0x64] ss:$12 sps:$4 sm:$0xff]   ;;  %v4723_v38 = vld [vmem:[%s5168_s3 + $0x60] ss:$12 sps:$4 sm:$0xff]  }
 0x37d   :  { %v3119_v48 = vmul.f32 -1.442695, %v1197_v47  ;;  %v3721_v7 = vld [vmem:[%s5168_s3 + $0x68] ss:$12 sps:$4 sm:$0xff]   ;;  %v4738_v47 = vld [vmem:[%s5168_s3 + $0x78] ss:$12 sps:$4 sm:$0xff]  }
 0x37e   :  { %3778 = vpow2.f32 %v3118_v37  ;;  %v4732_v56 = vld [vmem:[%s5168_s3 + $0x7c] ss:$12 sps:$4 sm:$0xff]   ;;  %v3725_v37 = vld [vmem:[%s5168_s3 + $0x80] ss:$12 sps:$4 sm:$0xff]  }
 0x37f   :  { %3780 = vpow2.f32 %v3119_v48  ;;  %v4748_v48 = vld [vmem:[%s5168_s3 + $0x94] ss:$12 sps:$4 sm:$0xff]  }
 0x388   :  { %v3779_v46 = vpop.eup %3778 }
 0x389   :  { %v1194_v57 = vadd.f32 1.0, %v3779_v46  ;;  %v3781_v16 = vpop.eup %3780  ;;  %v4754_v46 = vld [vmem:[%s5168_s3 + $0x90] ss:$12 sps:$4 sm:$0xff]  }
 0x38a   :  { %v1201_v35 = vadd.f32 1.0, %v3781_v16  ;;  %v4764_v16 = vld [vmem:[%s5168_s3 + $0xac] ss:$12 sps:$4 sm:$0xff]  }
 0x38b   :  { %3782 = vrcp.f32 %v1194_v57  ;;  %v3729_v57 = vld [vmem:[%s5168_s3 + $0x98] ss:$12 sps:$4 sm:$0xff]  }
 0x38c   :  { %3784 = vrcp.f32 %v1201_v35  ;;  %v4770_v35 = vld [vmem:[%s5168_s3 + $0xa8] ss:$12 sps:$4 sm:$0xff]  }
 0x395   :  { %v3783_v22 = vpop.eup %3782 }
 0x396   :  { %v1204_v19 = vmul.f32 %v3783_v22, %v1185_v62  ;;  %v3785_v50 = vpop.eup %3784  ;;  %v3733_v62 = vld [vmem:[%s5168_s3 + $0xb0] ss:$12 sps:$4 sm:$0xff]  }
 0x397   :  { %v1207_v6 = vsub.f32 1.0, %v3785_v50  ;;  %v1209_v18 = vmul.f32 %v3785_v50, %v4575_v43 }
 0x398   :  { %v1205_v2 = vadd.f32 %v1204_v19, %v5199_v52 }
 0x39a   :  { %3786 = vtanh.f32 %v1205_v2 }
 0x3a4   :  { %v3787_v36 = vpop.eup %3786 }
 0x3a5   :  { %v1208_v17 = vmul.f32 %v3787_v36, %v1207_v6 }
 0x3a7   :  { %v4644_v20 = vadd.f32 %v1209_v18, %v1208_v17 }
 0x3a9   :  { %v1221_v21 = vpack.c.bf16 %v4644_v20, %v4644_v20 }
 0x3ab   :  { %1415 = vmatmul.mubr.bf16.vlgmr.msra.gmra.mrb[36].mxu0 %v1221_v21  ;;  %3447 = vmatmul.mubr.bf16.vlgmr.msra.gmra.mrb[12].mxu1 %v1221_v21 }
 0x3ac   :  { %1687 = vmatprep.mubr.bf16.mxu0 %v5194_v55  ;;  %3466 = vmatprep.mubr.msk.bf16.mxu1 %vm4000_vm0, %v5195_v40 }
 0x3ad   :  { %1656 = vmatpush1.bf16.msra.mxu0 %v4659_v24  ;;  %3451 = vmatpush3.bf16.msra.mxu1 %v3705_v25 }
 0x3ae   :  { %3452 = vmatprep.subr.bf16.mxu1 %v5195_v40  ;;  %1657 = vmatprep.subr.bf16.mxu0 %v4669_v26 }
 0x3b1   :  { %1658 = vmatpush1.bf16.msra.mxu0 %v4675_v27  ;;  %3453 = vmatpush3.bf16.msra.mxu1 %v3709_v28  ;;  %v5200_v28 = vsel %vm4359_vm3, %v4356_v0, %v4363_v9 }
 0x3b2   :  { %3454 = vmatprep.subr.bf16.mxu1 %v5195_v40  ;;  %1659 = vmatprep.subr.bf16.mxu0 %v4685_v29 }
 0x3b5   :  { %1660 = vmatpush1.bf16.msra.mxu0 %v4691_v30  ;;  %3455 = vmatpush3.bf16.msra.mxu1 %v3713_v31 }
 0x3b6   :  { %3456 = vmatprep.subr.bf16.mxu1 %v5195_v40  ;;  %1661 = vmatprep.subr.bf16.mxu0 %v4701_v32 }
 0x3b9   :  { %1662 = vmatpush1.bf16.msra.mxu0 %v4707_v33  ;;  %3457 = vmatpush3.bf16.msra.mxu1 %v3717_v3 }
 0x3ba   :  { %3458 = vmatprep.subr.bf16.mxu1 %v5195_v40  ;;  %1663 = vmatprep.subr.bf16.mxu0 %v4717_v45 }
 0x3bd   :  { %1664 = vmatpush1.bf16.msra.mxu0 %v4723_v38  ;;  %3459 = vmatpush3.bf16.msra.mxu1 %v3721_v7 }
 0x3be   :  { %1665 = vmatprep.subr.bf16.mxu0 %v4732_v56  ;;  %3460 = vmatprep.subr.bf16.mxu1 %v5195_v40 }
 0x3c1   :  { %1666 = vmatpush1.bf16.msra.mxu0 %v4738_v47  ;;  %3461 = vmatpush3.bf16.msra.mxu1 %v3725_v37 }
 0x3c2   :  { %1667 = vmatprep.subr.bf16.mxu0 %v4748_v48  ;;  %3462 = vmatprep.subr.bf16.mxu1 %v5195_v40 }
 0x3c5   :  { %1668 = vmatpush1.bf16.msra.mxu0 %v4754_v46  ;;  %3463 = vmatpush3.bf16.msra.mxu1 %v3729_v57 }
 0x3c6   :  { %1669 = vmatprep.subr.bf16.mxu0 %v4764_v16  ;;  %3464 = vmatprep.subr.bf16.mxu1 %v5195_v40 }
 0x3c9   :  { %1670 = vmatpush1.bf16.msra.mxu0 %v4770_v35  ;;  %3465 = vmatpush3.bf16.msra.mxu1 %v3733_v62 }
 0x3ca   :  { %1928 = vmatprep.subr.bf16.mxu0 %v4654_v23  ;;  %3470 = vmatprep.subr.bf16.mxu1 %v5195_v40 }
 0x47e   :  { %v1416_v22 = vpop.f32.mrb[36].mxu0  ;;  %v1457_v19 = vpop.f32.mrb[12].mxu1 }
 0x47f   :  { %v1417_v52 = vadd.f32 %v1416_v22, %v4492_v51  ;;  %v1418_v2 = vpop.f32.mrb[37].mxu0  ;;  %v3448_v50 = vpop.f32.mrb[13].mxu1 }
 0x480   :  { %v1419_v6 = vadd.f32 %v1418_v2, %v4496_v5  ;;  %v1420_v36 = vpop.f32.mrb[38].mxu0  ;;  %v1460_v17 = vpop.f32.mrb[14].mxu1  ;;  %v1458_v2 = vadd.f32 %v1457_v19, %v4502_v44  ;;  %v5201_v50 = vsel %vm4445_vm4, %v4441_v10, %v4451_v53 }
 0x481   :  { %v1463_v18 = vadd.f32 %v1417_v52, %v4367_v13  ;;  %v1421_v21 = vpop.f32.mrb[39].mxu0  ;;  %v3449_v25 = vpop.f32.mrb[15].mxu1 }
 0x482   :  { %v1470_v31 = vadd.f32 %v1419_v6, %v5200_v28 }
 0x483   :  { %v3144_v3 = vmul.f32 -1.442695, %v1463_v18 }
 0x484   :  { %v3145_v7 = vmul.f32 -1.442695, %v1470_v31  ;;  %v3734_v31 = vld [vmem:[%s5168_s3 + $0x8] ss:$12 sps:$4 sm:$0xff]  }
 0x485   :  { %3788 = vpow2.f32 %v3144_v3  ;;  %v3735_v3 = vld [vmem:[%s5168_s3 + $0x20] ss:$12 sps:$4 sm:$0xff]  }
 0x486   :  { %3790 = vpow2.f32 %v3145_v7  ;;  %v3736_v7 = vld [vmem:[%s5168_s3 + $0x38] ss:$12 sps:$4 sm:$0xff]  }
 0x48f   :  { %v3789_v37 = vpop.eup %3788 }
 0x490   :  { %v1467_v57 = vadd.f32 1.0, %v3789_v37  ;;  %v3791_v62 = vpop.eup %3790  ;;  %v3737_v37 = vld [vmem:[%s5168_s3 + $0x50] ss:$12 sps:$4 sm:$0xff]  }
 0x491   :  { %v1474_v22 = vadd.f32 1.0, %v3791_v62  ;;  %v3739_v62 = vld [vmem:[%s5168_s3 + $0x80] ss:$12 sps:$4 sm:$0xff]  }
 0x492   :  { %3792 = vrcp.f32 %v1467_v57  ;;  %v3738_v57 = vld [vmem:[%s5168_s3 + $0x68] ss:$12 sps:$4 sm:$0xff]  }
 0x493   :  { %3794 = vrcp.f32 %v1474_v22  ;;  %v3740_v22 = vld [vmem:[%s5168_s3 + $0x98] ss:$12 sps:$4 sm:$0xff]  }
 0x49c   :  { %v3793_v13 = vpop.eup %3792 }
 0x49d   :  { %v1477_v52 = vmul.f32 %v3793_v13, %v1458_v2  ;;  %v3795_v36 = vpop.eup %3794  ;;  %v3741_v2 = vld [vmem:[%s5168_s3 + $0xb0] ss:$12 sps:$4 sm:$0xff]  }
 0x49e   :  { %v1480_v17 = vsub.f32 1.0, %v3795_v36  ;;  %v1482_v25 = vmul.f32 %v3795_v36, %v4644_v20 }
 0x49f   :  { %v1478_v6 = vadd.f32 %v1477_v52, %v5201_v50 }
 0x4a1   :  { %3796 = vtanh.f32 %v1478_v6 }
 0x4ab   :  { %v3797_v18 = vpop.eup %3796 }
 0x4ac   :  { %v1481_v21 = vmul.f32 %v3797_v18, %v1480_v17 }
 0x4ae   :  { %v4795_v28 = vadd.f32 %v1482_v25, %v1481_v21 }
 0x4b0   :  { %v1494_v19 = vpack.c.bf16 %v4795_v28, %v4795_v28 }
 0x4b2   :  { %1688 = vmatmul.mubr.bf16.vlgmr.msra.gmra.mrb[40].mxu0 %v1494_v19  ;;  %3467 = vmatmul.mubr.bf16.vlgmr.msra.gmra.mrb[16].mxu1 %v1494_v19 }
 0x4b3   :  { %1929 = vmatpush1.bf16.msra.mxu0 %v4659_v24  ;;  %1960 = vmatprep.mubr.bf16.mxu0 %v5194_v55 }
 0x4b4   :  { %1930 = vmatprep.subr.bf16.mxu0 %v4669_v26  ;;  %3486 = vmatprep.mubr.msk.bf16.mxu1 %vm4000_vm0, %v5195_v40 }
 0x4b5   :  { %3471 = vmatpush3.bf16.msra.mxu1 %v3734_v31 }
 0x4b6   :  { %3472 = vmatprep.subr.bf16.mxu1 %v5195_v40 }
 0x4b7   :  { %1931 = vmatpush1.bf16.msra.mxu0 %v4675_v27 }
 0x4b8   :  { %1932 = vmatprep.subr.bf16.mxu0 %v4685_v29 }
 0x4b9   :  { %3473 = vmatpush3.bf16.msra.mxu1 %v3735_v3  ;;  %v5202_v3 = vsel %vm4359_vm3, %v4363_v9, %v4356_v0  ;;  %v5203_v0 = vsel %vm4445_vm4, %v4451_v53, %v4441_v10  ;;  %v3742_v10 = vld [vmem:[%s5168_s3 + $0x8] ss:$12 sps:$4 sm:$0xff]   ;;  %v3743_v53 = vld [vmem:[%s5168_s3 + $0x20] ss:$12 sps:$4 sm:$0xff]  }
 0x4ba   :  { %3474 = vmatprep.subr.bf16.mxu1 %v5195_v40 }
 0x4bb   :  { %1933 = vmatpush1.bf16.msra.mxu0 %v4691_v30 }
 0x4bc   :  { %1934 = vmatprep.subr.bf16.mxu0 %v4701_v32 }
 0x4bd   :  { %3475 = vmatpush3.bf16.msra.mxu1 %v3736_v7 }
 0x4be   :  { %3476 = vmatprep.subr.bf16.mxu1 %v5195_v40 }
 0x4bf   :  { %1935 = vmatpush1.bf16.msra.mxu0 %v4707_v33 }
 0x4c0   :  { %1936 = vmatprep.subr.bf16.mxu0 %v4717_v45 }
 0x4c1   :  { %3477 = vmatpush3.bf16.msra.mxu1 %v3737_v37 }
 0x4c2   :  { %3478 = vmatprep.subr.bf16.mxu1 %v5195_v40 }
 0x4c3   :  { %1937 = vmatpush1.bf16.msra.mxu0 %v4723_v38 }
 0x4c4   :  { %1938 = vmatprep.subr.bf16.mxu0 %v4732_v56 }
 0x4c5   :  { %3479 = vmatpush3.bf16.msra.mxu1 %v3738_v57 }
 0x4c6   :  { %3480 = vmatprep.subr.bf16.mxu1 %v5195_v40 }
 0x4c7   :  { %1939 = vmatpush1.bf16.msra.mxu0 %v4738_v47 }
 0x4c8   :  { %1940 = vmatprep.subr.bf16.mxu0 %v4748_v48 }
 0x4c9   :  { %3481 = vmatpush3.bf16.msra.mxu1 %v3739_v62 }
 0x4ca   :  { %3482 = vmatprep.subr.bf16.mxu1 %v5195_v40 }
 0x4cb   :  { %1941 = vmatpush1.bf16.msra.mxu0 %v4754_v46 }
 0x4cc   :  { %1942 = vmatprep.subr.bf16.mxu0 %v4764_v16 }
 0x4cd   :  { %3483 = vmatpush3.bf16.msra.mxu1 %v3740_v22 }
 0x4ce   :  { %3484 = vmatprep.subr.bf16.mxu1 %v5195_v40 }
 0x4cf   :  { %1943 = vmatpush1.bf16.msra.mxu0 %v4770_v35 }
 0x4d0   :  { %2201 = vmatprep.subr.bf16.mxu0 %v4654_v23 }
 0x4d1   :  { %3485 = vmatpush3.bf16.msra.mxu1 %v3741_v2 }
 0x4d2   :  { %3490 = vmatprep.subr.bf16.mxu1 %v5195_v40 }
 0x585   :  { %v1689_v13 = vpop.f32.mrb[40].mxu0  ;;  %v1730_v52 = vpop.f32.mrb[16].mxu1 }
 0x586   :  { %v1690_v50 = vadd.f32 %v1689_v13, %v4492_v51  ;;  %v1691_v6 = vpop.f32.mrb[41].mxu0  ;;  %v3468_v36 = vpop.f32.mrb[17].mxu1 }
 0x587   :  { %v1692_v17 = vadd.f32 %v1691_v6, %v4496_v5  ;;  %v1693_v18 = vpop.f32.mrb[42].mxu0  ;;  %v1733_v21 = vpop.f32.mrb[18].mxu1  ;;  %v1731_v6 = vadd.f32 %v1730_v52, %v4502_v44 }
 0x588   :  { %v1736_v25 = vadd.f32 %v1690_v50, %v4371_v14  ;;  %v1694_v19 = vpop.f32.mrb[43].mxu0  ;;  %v3469_v31 = vpop.f32.mrb[19].mxu1 }
 0x589   :  { %v1743_v7 = vadd.f32 %v1692_v17, %v5202_v3  ;;  %v3744_v31 = vld [vmem:[%s5168_s3 + $0x38] ss:$12 sps:$4 sm:$0xff]   ;;  %v3746_v3 = vld [vmem:[%s5168_s3 + $0x68] ss:$12 sps:$4 sm:$0xff]  }
 0x58a   :  { %v3170_v37 = vmul.f32 -1.442695, %v1736_v25 }
 0x58b   :  { %v3171_v57 = vmul.f32 -1.442695, %v1743_v7  ;;  %v3747_v7 = vld [vmem:[%s5168_s3 + $0x80] ss:$12 sps:$4 sm:$0xff]  }
 0x58c   :  { %3798 = vpow2.f32 %v3170_v37  ;;  %v3748_v37 = vld [vmem:[%s5168_s3 + $0x98] ss:$12 sps:$4 sm:$0xff]  }
 0x58d   :  { %3800 = vpow2.f32 %v3171_v57  ;;  %v3749_v57 = vld [vmem:[%s5168_s3 + $0xb0] ss:$12 sps:$4 sm:$0xff]  }
 0x596   :  { %v3799_v62 = vpop.eup %3798 }
 0x597   :  { %v1740_v22 = vadd.f32 1.0, %v3799_v62  ;;  %v3801_v2 = vpop.eup %3800 }
 0x598   :  { %v1747_v13 = vadd.f32 1.0, %v3801_v2 }
 0x599   :  { %3802 = vrcp.f32 %v1740_v22 }
 0x59a   :  { %3804 = vrcp.f32 %v1747_v13 }
 0x5a3   :  { %v3803_v14 = vpop.eup %3802 }
 0x5a4   :  { %v1750_v50 = vmul.f32 %v3803_v14, %v1731_v6  ;;  %v3805_v36 = vpop.eup %3804 }
 0x5a5   :  { %v1753_v17 = vsub.f32 1.0, %v3805_v36  ;;  %v1755_v25 = vmul.f32 %v3805_v36, %v4795_v28 }
 0x5a6   :  { %v1751_v9 = vadd.f32 %v1750_v50, %v5203_v0 }
 0x5a8   :  { %3806 = vtanh.f32 %v1751_v9 }
 0x5b2   :  { %v3807_v18 = vpop.eup %3806 }
 0x5b3   :  { %v1754_v21 = vmul.f32 %v3807_v18, %v1753_v17  ;;  %v5204_v18 = vsel %vm4359_vm3, %v4373_v15, %v4354_v60  ;;  %v5205_v60 = vsel %vm4445_vm4, %v4473_v63, %v4439_v4  ;;  %v3750_v63 = vld [vmem:[%s5168_s3 + $0x8] ss:$12 sps:$4 sm:$0xff]   ;;  %v3751_v4 = vld [vmem:[%s5168_s3 + $0x20] ss:$12 sps:$4 sm:$0xff]  }
 0x5b5   :  { %v4865_v19 = vadd.f32 %v1755_v25, %v1754_v21 }
 0x5b7   :  { %v1767_v52 = vpack.c.bf16 %v4865_v19, %v4865_v19 }
 0x5b9   :  { %1961 = vmatmul.mubr.bf16.vlgmr.msra.gmra.mrb[44].mxu0 %v1767_v52  ;;  %3487 = vmatmul.mubr.bf16.vlgmr.msra.gmra.mrb[20].mxu1 %v1767_v52 }
 0x5ba   :  { %2202 = vmatpush1.bf16.msra.mxu0 %v4659_v24  ;;  %2233 = vmatprep.mubr.bf16.mxu0 %v5194_v55 }
 0x5bb   :  { %2203 = vmatprep.subr.bf16.mxu0 %v4669_v26  ;;  %3506 = vmatprep.mubr.msk.bf16.mxu1 %vm4000_vm0, %v5195_v40 }
 0x5bc   :  { %3491 = vmatpush3.bf16.msra.mxu1 %v3742_v10 }
 0x5bd   :  { %3492 = vmatprep.subr.bf16.mxu1 %v5195_v40 }
 0x5be   :  { %2204 = vmatpush1.bf16.msra.mxu0 %v4675_v27 }
 0x5bf   :  { %2205 = vmatprep.subr.bf16.mxu0 %v4685_v29 }
 0x5c0   :  { %3493 = vmatpush3.bf16.msra.mxu1 %v3743_v53 }
 0x5c1   :  { %3494 = vmatprep.subr.bf16.mxu1 %v5195_v40 }
 0x5c2   :  { %2206 = vmatpush1.bf16.msra.mxu0 %v4691_v30 }
 0x5c3   :  { %2207 = vmatprep.subr.bf16.mxu0 %v4701_v32 }
 0x5c4   :  { %3495 = vmatpush3.bf16.msra.mxu1 %v3744_v31 }
 0x5c5   :  { %3496 = vmatprep.subr.bf16.mxu1 %v5195_v40 }
 0x5c6   :  { %2208 = vmatpush1.bf16.msra.mxu0 %v4707_v33 }
 0x5c7   :  { %2209 = vmatprep.subr.bf16.mxu0 %v4717_v45 }
 0x5ca   :  { %2210 = vmatpush1.bf16.msra.mxu0 %v4723_v38 }
 0x5cb   :  { %2211 = vmatprep.subr.bf16.mxu0 %v4732_v56 }
 0x5ce   :  { %2212 = vmatpush1.bf16.msra.mxu0 %v4738_v47 }
 0x5cf   :  { %2213 = vmatprep.subr.bf16.mxu0 %v4748_v48 }
 0x5d2   :  { %2214 = vmatpush1.bf16.msra.mxu0 %v4754_v46 }
 0x5d3   :  { %2215 = vmatprep.subr.bf16.mxu0 %v4764_v16 }
 0x5d6   :  { %2216 = vmatpush1.bf16.msra.mxu0 %v4770_v35 }
 0x5d7   :  { %2474 = vmatprep.subr.bf16.mxu0 %v4654_v23  ;;  %v3745_v23 = vld [vmem:[%s5168_s3 + $0x50] ss:$12 sps:$4 sm:$0xff]  }
 0x5d8   :  { %3497 = vmatpush3.bf16.msra.mxu1 %v3745_v23 }
 0x5d9   :  { %3498 = vmatprep.subr.bf16.mxu1 %v5195_v40 }
 0x5dc   :  { %3499 = vmatpush3.bf16.msra.mxu1 %v3746_v3 }
 0x5dd   :  { %3500 = vmatprep.subr.bf16.mxu1 %v5195_v40 }
 0x5e0   :  { %3501 = vmatpush3.bf16.msra.mxu1 %v3747_v7 }
 0x5e1   :  { %3502 = vmatprep.subr.bf16.mxu1 %v5195_v40 }
 0x5e4   :  { %3503 = vmatpush3.bf16.msra.mxu1 %v3748_v37 }
 0x5e5   :  { %3504 = vmatprep.subr.bf16.mxu1 %v5195_v40 }
 0x5e8   :  { %3505 = vmatpush3.bf16.msra.mxu1 %v3749_v57 }
 0x5e9   :  { %3510 = vmatprep.subr.bf16.mxu1 %v5195_v40 }
 0x68c   :  { %v1962_v62 = vpop.f32.mrb[44].mxu0  ;;  %v2003_v22 = vpop.f32.mrb[20].mxu1 }
 0x68d   :  { %v1963_v2 = vadd.f32 %v1962_v62, %v4492_v51  ;;  %v1964_v13 = vpop.f32.mrb[45].mxu0  ;;  %v3488_v6 = vpop.f32.mrb[21].mxu1  ;;  %v2004_v3 = vadd.f32 %v2003_v22, %v4502_v44 }
 0x68e   :  { %v1965_v14 = vadd.f32 %v1964_v13, %v4496_v5  ;;  %v1966_v50 = vpop.f32.mrb[46].mxu0  ;;  %v2006_v0 = vpop.f32.mrb[22].mxu1 }
 0x68f   :  { %v2009_v9 = vadd.f32 %v1963_v2, %v4389_v34  ;;  %v1967_v36 = vpop.f32.mrb[47].mxu0  ;;  %v3489_v17 = vpop.f32.mrb[23].mxu1  ;;  %v5206_v50 = vsel %vm4359_vm3, %v4400_v41, %v4349_v54  ;;  %v5207_v54 = vsel %vm4445_vm4, %v4449_v42, %v4443_v12  ;;  %v2696_v12 = vld [vmem:[%s5171_s6] sm:$0xff]  ;;  %v2697_v42 = vld [vmem:[%s5171_s6 + $0x8] sm:$0xff] }
 0x690   :  { %v2016_v21 = vadd.f32 %v1965_v14, %v5204_v18 }
 0x691   :  { %v3196_v25 = vmul.f32 -1.442695, %v2009_v9 }
 0x692   :  { %v3197_v52 = vmul.f32 -1.442695, %v2016_v21 }
 0x693   :  { %3808 = vpow2.f32 %v3196_v25 }
 0x694   :  { %3810 = vpow2.f32 %v3197_v52 }
 0x69d   :  { %v3809_v10 = vpop.eup %3808 }
 0x69e   :  { %v2013_v53 = vadd.f32 1.0, %v3809_v10  ;;  %v3811_v31 = vpop.eup %3810 }
 0x69f   :  { %v2020_v23 = vadd.f32 1.0, %v3811_v31 }
 0x6a0   :  { %3812 = vrcp.f32 %v2013_v53 }
 0x6a1   :  { %3814 = vrcp.f32 %v2020_v23 }
 0x6aa   :  { %v3813_v34 = vpop.eup %3812 }
 0x6ab   :  { %v2023_v7 = vmul.f32 %v3813_v34, %v2004_v3  ;;  %v3815_v37 = vpop.eup %3814 }
 0x6ac   :  { %v2026_v57 = vsub.f32 1.0, %v3815_v37  ;;  %v2028_v13 = vmul.f32 %v3815_v37, %v4865_v19  ;;  %v2698_v37 = vld [vmem:[%s5171_s6 + $0x10] sm:$0xff] }
 0x6ad   :  { %v2024_v15 = vadd.f32 %v2023_v7, %v5205_v60 }
 0x6af   :  { %3816 = vtanh.f32 %v2024_v15  ;;  %v3591_v15 = vpack.c.bf16 %v2697_v42, %v2696_v12 }
 0x6b9   :  { %v3817_v62 = vpop.eup %3816 }
 0x6ba   :  { %v2027_v2 = vmul.f32 %v3817_v62, %v2026_v57  ;;  %v2699_v57 = vld [vmem:[%s5171_s6 + $0x18] sm:$0xff]  ;;  %v2700_v62 = vld [vmem:[%s5171_s6 + $0x20] sm:$0xff] }
 0x6bc   :  { %v4935_v6 = vadd.f32 %v2028_v13, %v2027_v2  ;;  %v2701_v2 = vld [vmem:[%s5171_s6 + $0x28] sm:$0xff] }
 0x6bd   :  { %v3599_v13 = vpack.c.bf16 %v2701_v2, %v2700_v62 }
 0x6be   :  { %v2040_v22 = vpack.c.bf16 %v4935_v6, %v4935_v6 }
 0x6c0   :  { %2234 = vmatmul.mubr.bf16.vlgmr.msra.gmra.mrb[48].mxu0 %v2040_v22  ;;  %3507 = vmatmul.mubr.bf16.vlgmr.msra.gmra.mrb[24].mxu1 %v2040_v22  ;;  %v2702_v22 = vld [vmem:[%s5171_s6 + $0x30] sm:$0xff] }
 0x6c1   :  { %2475 = vmatpush1.bf16.msra.mxu0 %v4659_v24  ;;  %2506 = vmatprep.mubr.bf16.mxu0 %v5194_v55  ;;  %v3752_v55 = vld [vmem:[%s5168_s3 + $0x38] ss:$12 sps:$4 sm:$0xff]   ;;  %v3753_v24 = vld [vmem:[%s5168_s3 + $0x50] ss:$12 sps:$4 sm:$0xff]  }
 0x6c2   :  { %2476 = vmatprep.subr.bf16.mxu0 %v4669_v26  ;;  %3526 = vmatprep.mubr.msk.bf16.mxu1 %vm4000_vm0, %v5195_v40  ;;  %v3754_v26 = vld [vmem:[%s5168_s3 + $0x68] ss:$12 sps:$4 sm:$0xff]  }
 0x6c3   :  { %3511 = vmatpush3.bf16.msra.mxu1 %v3750_v63  ;;  %v2703_v63 = vld [vmem:[%s5171_s6 + $0x38] sm:$0xff] }
 0x6c4   :  { %3512 = vmatprep.subr.bf16.mxu1 %v5195_v40 }
 0x6c5   :  { %2477 = vmatpush1.bf16.msra.mxu0 %v4675_v27  ;;  %v3755_v27 = vld [vmem:[%s5168_s3 + $0x80] ss:$12 sps:$4 sm:$0xff]  }
 0x6c6   :  { %2478 = vmatprep.subr.bf16.mxu0 %v4685_v29  ;;  %v3756_v29 = vld [vmem:[%s5168_s3 + $0x98] ss:$12 sps:$4 sm:$0xff]  }
 0x6c7   :  { %3513 = vmatpush3.bf16.msra.mxu1 %v3751_v4  ;;  %v3603_v4 = vpack.c.bf16 %v2703_v63, %v2702_v22  ;;  %v5100_v63 = vsel %vm373_vm2, %v4795_v28, %v4865_v19  ;;  %v3253_v22 = vld [vmem:[#allocation5] ss:$0 sm:$0xff] }
 0x6c8   :  { %3514 = vmatprep.subr.bf16.mxu1 %v5195_v40 }
 0x6c9   :  { %2479 = vmatpush1.bf16.msra.mxu0 %v4691_v30  ;;  %v3757_v30 = vld [vmem:[%s5168_s3 + $0xb0] ss:$12 sps:$4 sm:$0xff]  }
 0x6ca   :  { %2480 = vmatprep.subr.bf16.mxu0 %v4701_v32 }
 0x6cb   :  { %3515 = vmatpush3.bf16.msra.mxu1 %v3752_v55  ;;  %v2704_v55 = vld [vmem:[%s5171_s6 + $0x40] sm:$0xff] }
 0x6cc   :  { %3516 = vmatprep.subr.bf16.mxu1 %v5195_v40 }
 0x6cd   :  { %2481 = vmatpush1.bf16.msra.mxu0 %v4707_v33 }
 0x6ce   :  { %2482 = vmatprep.subr.bf16.mxu0 %v4717_v45 }
 0x6cf   :  { %3517 = vmatpush3.bf16.msra.mxu1 %v3753_v24  ;;  %v2705_v24 = vld [vmem:[%s5171_s6 + $0x48] sm:$0xff] }
 0x6d0   :  { %3518 = vmatprep.subr.bf16.mxu1 %v5195_v40 }
 0x6d1   :  { %2483 = vmatpush1.bf16.msra.mxu0 %v4723_v38 }
 0x6d2   :  { %2484 = vmatprep.subr.bf16.mxu0 %v4732_v56 }
 0x6d3   :  { %3519 = vmatpush3.bf16.msra.mxu1 %v3754_v26  ;;  %v3607_v26 = vpack.c.bf16 %v2705_v24, %v2704_v55  ;;  %v5114_v55 = vsel %vm373_vm2, %v4935_v6, %v4644_v20 }
 0x6d4   :  { %3520 = vmatprep.subr.bf16.mxu1 %v5195_v40 }
 0x6d5   :  { %2485 = vmatpush1.bf16.msra.mxu0 %v4738_v47 }
 0x6d6   :  { %2486 = vmatprep.subr.bf16.mxu0 %v4748_v48 }
 0x6d7   :  { %3521 = vmatpush3.bf16.msra.mxu1 %v3755_v27  ;;  %v2706_v27 = vld [vmem:[%s5171_s6 + $0x50] sm:$0xff] }
 0x6d8   :  { %3522 = vmatprep.subr.bf16.mxu1 %v5195_v40 }
 0x6d9   :  { %2487 = vmatpush1.bf16.msra.mxu0 %v4754_v46 }
 0x6da   :  { %2488 = vmatprep.subr.bf16.mxu0 %v4764_v16 }
 0x6db   :  { %3523 = vmatpush3.bf16.msra.mxu1 %v3756_v29  ;;  %v2707_v29 = vld [vmem:[%s5171_s6 + $0x58] sm:$0xff] }
 0x6dc   :  { %3524 = vmatprep.subr.bf16.mxu1 %v5195_v40 }
 0x6dd   :  { %2489 = vmatpush1.bf16.msra.mxu0 %v4770_v35 }
 0x6df   :  { %3525 = vmatpush3.bf16.msra.mxu1 %v3757_v30  ;;  %v2610_v30 = vld [vmem:[#allocation12] sm:$0xff] }
 0x6e0   :  { %3592 = vmatprep.subr.bf16.mxu1 %v3591_v15 }
 0x793   :  { %v2235_v32 = vpop.f32.mrb[48].mxu0  ;;  %v2276_v33 = vpop.f32.mrb[24].mxu1 }
 0x794   :  { %v2236_v45 = vadd.f32 %v2235_v32, %v4492_v51  ;;  %v2237_v38 = vpop.f32.mrb[49].mxu0  ;;  %v3508_v56 = vpop.f32.mrb[25].mxu1  ;;  %v2277_v52 = vadd.f32 %v2276_v33, %v4502_v44  ;;  %v3611_v32 = vpack.c.bf16 %v2707_v29, %v2706_v27  ;;  %v4001_v33 = vmov 0.0|0.0   ;;  %v3251_v29 = vld [vmem:[%s5173_s8] ss:$0 sm:$0xff] }
 0x795   :  { %v2238_v47 = vadd.f32 %v2237_v38, %v4496_v5  ;;  %v2239_v48 = vpop.f32.mrb[50].mxu0  ;;  %v2279_v46 = vpop.f32.mrb[26].mxu1  ;;  %3585 = vmatprep.subr.bf16.mxu0 %v4001_v33  ;;  %v2708_v38 = vld [vmem:[%s5171_s6 + $0x60] sm:$0xff]  ;;  %v2709_v56 = vld [vmem:[%s5171_s6 + $0x68] sm:$0xff] }
 0x796   :  { %v2282_v16 = vadd.f32 %v2236_v45, %v4408_v58  ;;  %v2240_v35 = vpop.f32.mrb[51].mxu0  ;;  %v3509_v14 = vpop.f32.mrb[27].mxu1  ;;  %v2611_v45 = vld [vmem:[#allocation12 + $0x8] sm:$0xff]  ;;  %v2612_v48 = vld [vmem:[#allocation12 + $0x10] sm:$0xff]  ;;  %v2613_v46 = vld [vmem:[#allocation12 + $0x18] sm:$0xff] }
 0x797   :  { %v2289_v0 = vadd.f32 %v2238_v47, %v5206_v50  ;;  %v3586_v47 = vpack.c.bf16 %v2611_v45, %v2610_v30  ;;  %v3589_v35 = vpack.c.bf16 %v2613_v46, %v2612_v48  ;;  %v2710_v14 = vld [vmem:[%s5171_s6 + $0x70] sm:$0xff]  ;;  %v2711_v50 = vld [vmem:[%s5171_s6 + $0x78] sm:$0xff] }
 0x798   :  { %v3222_v9 = vmul.f32 -1.442695, %v2282_v16  ;;  %v3615_v16 = vpack.c.bf16 %v2709_v56, %v2708_v38 }
 0x799   :  { %v3223_v36 = vmul.f32 -1.442695, %v2289_v0  ;;  %v3619_v0 = vpack.c.bf16 %v2711_v50, %v2710_v14 }
 0x79a   :  { %3818 = vpow2.f32 %v3222_v9  ;;  %v2609_v9 = vld [vmem:[%s5166_s1] sm:$0x1] }
 0x79b   :  { %3820 = vpow2.f32 %v3223_v36 }
 0x7a4   :  { %v3819_v17 = vpop.eup %3818 }
 0x7a5   :  { %v2286_v18 = vadd.f32 1.0, %v3819_v17  ;;  %v3821_v21 = vpop.eup %3820 }
 0x7a6   :  { %v2293_v25 = vadd.f32 1.0, %v3821_v21 }
 0x7a7   :  { %3822 = vrcp.f32 %v2286_v18 }
 0x7a8   :  { %3824 = vrcp.f32 %v2293_v25 }
 0x7b1   :  { %v3823_v58 = vpop.eup %3822 }
 0x7b2   :  { %v2296_v10 = vmul.f32 %v3823_v58, %v2277_v52  ;;  %v3825_v53 = vpop.eup %3824 }
 0x7b3   :  { %v2299_v31 = vsub.f32 1.0, %v3825_v53  ;;  %v2301_v34 = vmul.f32 %v3825_v53, %v4935_v6 }
 0x7b4   :  { %v2297_v41 = vadd.f32 %v2296_v10, %v5207_v54 }
 0x7b6   :  { %3826 = vtanh.f32 %v2297_v41 }
 0x7c0   :  { %v3827_v23 = vpop.eup %3826 }
 0x7c1   :  { %v2300_v3 = vmul.f32 %v3827_v23, %v2299_v31  ;;  %v5208_v31 = vsel %vm4359_vm3, %v4412_v61, %v4410_v59  ;;  %v5210_v59 = vsel %vm4445_vm4, %v4463_v11, %v5209_v8  ;;  %v5093_v11 = vsel %vm373_vm2, %v4644_v20, %v4935_v6  ;;  %v5212_v6 = vld [vmem:[#allocation19_spill] sm:$0xff] }
 0x7c3   :  { %v5003_v7 = vadd.f32 %v2301_v34, %v2300_v3 }
 0x7c5   :  { %v2313_v60 = vpack.c.bf16 %v5003_v7, %v5003_v7  ;;  %v5086_v39 = vsel %vm373_vm2, %v4575_v43, %v5003_v7  ;;  %v5121_v24 = vsel %vm373_vm2, %v5003_v7, %v4575_v43 }
 0x7c7   :  { %2507 = vmatmul.mubr.bf16.vlgmr.msra.gmra.mrb[52].mxu0 %v2313_v60  ;;  %3527 = vmatmul.mubr.bf16.vlgmr.msra.gmra.mrb[28].mxu1 %v2313_v60 }
 0x7c8   :  { %3538 = vmatprep.mubr.msk.f32.mxu0 %vm4000_vm0, %v5195_v40  ;;  %3594 = vmatpush3.bf16.msra.mxu1 %v3591_v15  ;;  %v3595_v40 = vpack.c.bf16 %v2699_v57, %v2698_v37 }
 0x7c9   :  { %3587 = vmatpush3.bf16.msra.mxu0 %v3586_v47 }
 0x7ca   :  { %3596 = vmatprep.subr.bf16.mxu1 %v3595_v40  ;;  %3588 = vmatprep.subr.bf16.mxu0 %v4001_v33 }
 0x7cc   :  { %3598 = vmatpush3.bf16.msra.mxu1 %v3595_v40 }
 0x7cd   :  { %3600 = vmatprep.subr.bf16.mxu1 %v3599_v13  ;;  %3590 = vmatpush3.bf16.msra.mxu0 %v3589_v35 }
 0x7d0   :  { %3602 = vmatpush3.bf16.msra.mxu1 %v3599_v13  ;;  %3539 = vmatmul.mubr.msk.f32.vlgmr.msra.gmra.mrb[56].mxu0 %vm2614_vm5, %v2609_v9 }
 0x7d1   :  { %3604 = vmatprep.subr.bf16.mxu1 %v3603_v4 }
 0x7d4   :  { %3606 = vmatpush3.bf16.msra.mxu1 %v3603_v4  ;;  %v5107_v4 = vsel %vm373_vm2, %v4865_v19, %v4795_v28 }
 0x7d5   :  { %3608 = vmatprep.subr.bf16.mxu1 %v3607_v26 }
 0x7d8   :  { %3610 = vmatpush3.bf16.msra.mxu1 %v3607_v26 }
 0x7d9   :  { %3612 = vmatprep.subr.bf16.mxu1 %v3611_v32 }
 0x7dc   :  { %3614 = vmatpush3.bf16.msra.mxu1 %v3611_v32 }
 0x7dd   :  { %3616 = vmatprep.subr.bf16.mxu1 %v3615_v16 }
 0x7e0   :  { %3618 = vmatpush3.bf16.msra.mxu1 %v3615_v16 }
 0x7e1   :  { %3620 = vmatprep.subr.bf16.mxu1 %v3619_v0 }
 0x7e4   :  { %3622 = vmatpush3.bf16.msra.mxu1 %v3619_v0 }
 0x89a   :  { %v2508_v36 = vpop.f32.mrb[52].mxu0  ;;  %v2549_v17 = vpop.f32.mrb[28].mxu1 }
 0x89b   :  { %v2509_v18 = vadd.f32 %v2508_v36, %v4492_v51  ;;  %v2510_v21 = vpop.f32.mrb[53].mxu0  ;;  %v3528_v25 = vpop.f32.mrb[29].mxu1  ;;  %v2550_v42 = vadd.f32 %v2549_v17, %v4502_v44 }
 0x89c   :  { %v2511_v52 = vadd.f32 %v2510_v21, %v4496_v5  ;;  %v2512_v58 = vpop.f32.mrb[54].mxu0  ;;  %v2552_v10 = vpop.f32.mrb[30].mxu1  ;;  %v3252_v21 = vld [vmem:[%s5174_s9] ss:$0 sm:$0xff]  ;;  %s4002_s9 = smov [#allocation14]  }
 0x89d   :  { %v2555_v54 = vadd.f32 %v2509_v18, %v4428_v49  ;;  %v2513_v41 = vpop.f32.mrb[55].mxu0  ;;  %v3529_v53 = vpop.f32.mrb[31].mxu1  ;;  %s3016_s2 = sshll.u32 %s4002_s9, 4  ;;  %s3017_s2 = int_to_ptr.vmem [resolvable:$true] %s3016_s2 }
 0x89e   :  { %v2562_v23 = vadd.f32 %v2511_v52, %v5208_v31  ;;  %s3960_s22 = scalar_lea.vmem %s3017_s2, 128  ;;  %p3965_p5 = scmp.lt.s32.totalorder %s3017_s2, %s3017_s2 }
 0x89f   :  { %v3248_v3 = vmul.f32 -1.442695, %v2555_v54  ;;  %p3961_p4 = scmp.ne.s32.totalorder %s3017_s2, %s3960_s22  ;;  %p3966_p6 = scmp.lt.s32.totalorder %s3960_s22, %s3960_s22 }
 0x8a0   :  { %v3249_v34 = vmul.f32 -1.442695, %v2562_v23 }
 0x8a1   :  { %3828 = vpow2.f32 %v3248_v3  ;;  %p3967_p7 = por %p3966_p6, %p3965_p5 }
 0x8a2   :  { %3830 = vpow2.f32 %v3249_v34 }
 0x8a3   :  { %v2684_v19 = vpop.f32.mrb[56].mxu0  ;;  %p3968_p8 = pnand %p3967_p7, %p3961_p4 }
 0x8a4   :  { %v3540_v20 = vpop.f32.mrb[57].mxu0  ;;  %v2715_v26 = vrot.slane %v2684_v19, %v5212_v6 }
 0x8ab   :  { %v3829_v51 = vpop.eup %3828 }
 0x8ac   :  { %v2559_v60 = vadd.f32 1.0, %v3829_v51  ;;  %v3831_v5 = vpop.eup %3830 }
 0x8ad   :  { %v2566_v12 = vadd.f32 1.0, %v3831_v5 }
 0x8ae   :  { %3832 = vrcp.f32 %v2559_v60 }
 0x8af   :  { %3834 = vrcp.f32 %v2566_v12 }
 0x8b8   :  { %v3833_v49 = vpop.eup %3832 }
 0x8b9   :  { %v2569_v15 = vmul.f32 %v3833_v49, %v2550_v42  ;;  %v3835_v37 = vpop.eup %3834 }
 0x8ba   :  { %v2572_v57 = vsub.f32 1.0, %v3835_v37  ;;  %v2574_v2 = vmul.f32 %v3835_v37, %v5003_v7 }
 0x8bb   :  { %v2570_v61 = vadd.f32 %v2569_v15, %v5210_v59 }
 0x8bd   :  { %3836 = vtanh.f32 %v2570_v61 }
 0x8c7   :  { %v3837_v40 = vpop.eup %3836 }
 0x8c8   :  { %v2573_v62 = vmul.f32 %v3837_v40, %v2572_v57 }
 0x8ca   :  { %v2575_v13 = vadd.f32 %v2574_v2, %v2573_v62 }
 0x8cc   :  { %v5079_v44 = vsel %vm373_vm2, %v4505_v1, %v2575_v13  ;;  %v5127_v28 = vsel %vm373_vm2, %v2575_v13, %v4505_v1 }
 0x8cd   :  { %3573 = vmatprep.mubr.f32.mxu1 %v5079_v44 }
 0x8ce   :  { %3574 = vmatmul.mubr.f32.vlgmr.msra.gmra.mrb[32].mxu1 %v5086_v39 }
 0x8cf   :  { %3576 = vmatprep.mubr.f32.mxu1 %v5093_v11 }
 0x8d2   :  { %3577 = vmatmul.mubr.f32.gmra.mrb[34].mxu1 %v5100_v63 }
 0x8d3   :  { %3579 = vmatprep.mubr.f32.mxu1 %v5107_v4 }
 0x8d6   :  { %3580 = vmatmul.mubr.f32.gmra.mrb[36].mxu1 %v5114_v55 }
 0x8d7   :  { %3582 = vmatprep.mubr.f32.mxu1 %v5121_v24 }
 0x8da   :  { %3583 = vmatmul.mubr.f32.gmra.mrb[38].mxu1 %v5127_v28 }
 0x9a1   :  { %v3575_v27 = vpop.f32.mrb[32].mxu1 }
 0x9a2   :  { %v2788_v43 = vadd.f32 %v3575_v27, %v2715_v26  ;;  %v2782_v7 = vpop.f32.mrb[33].mxu1 }
 0x9a3   :  { %v2783_v30 = vadd.f32 %v2782_v7, %v2715_v26 }
 0x9a4   :  { %v2829_v32 = vadd.f32 %v3251_v29, %v2788_v43 }
 0x9a5   :  { %v2828_v33 = vadd.f32 %v3251_v29, %v2783_v30  ;;  %v3578_v45 = vpop.f32.mrb[34].mxu1 }
 0x9a6   :  { %3838 = vtanh.f32 %v2829_v32  ;;  %v2798_v1 = vadd.f32 %v3578_v45, %v2715_v26  ;;  %v2792_v38 = vpop.f32.mrb[35].mxu1 }
 0x9a7   :  { %3840 = vtanh.f32 %v2828_v33  ;;  %v2793_v56 = vadd.f32 %v2792_v38, %v2715_v26 }
 0x9a8   :  { %v2831_v47 = vadd.f32 %v3251_v29, %v2798_v1 }
 0x9a9   :  { %v2830_v48 = vadd.f32 %v3251_v29, %v2793_v56  ;;  %v3581_v46 = vpop.f32.mrb[36].mxu1 }
 0x9aa   :  { %3842 = vtanh.f32 %v2831_v47  ;;  %v2808_v16 = vadd.f32 %v3581_v46, %v2715_v26  ;;  %v2802_v35 = vpop.f32.mrb[37].mxu1 }
 0x9ab   :  { %3844 = vtanh.f32 %v2830_v48  ;;  %v2803_v14 = vadd.f32 %v2802_v35, %v2715_v26 }
 0x9ac   :  { %v2833_v50 = vadd.f32 %v3251_v29, %v2808_v16 }
 0x9ad   :  { %v2832_v0 = vadd.f32 %v3251_v29, %v2803_v14  ;;  %v3584_v9 = vpop.f32.mrb[38].mxu1 }
 0x9ae   :  { %3846 = vtanh.f32 %v2833_v50  ;;  %v2818_v36 = vadd.f32 %v3584_v9, %v2715_v26  ;;  %v2812_v17 = vpop.f32.mrb[39].mxu1 }
 0x9af   :  { %3848 = vtanh.f32 %v2832_v0  ;;  %v2813_v18 = vadd.f32 %v2812_v17, %v2715_v26 }
 0x9b0   :  { %v3839_v25 = vpop.eup %3838  ;;  %v2835_v52 = vadd.f32 %v3251_v29, %v2818_v36 }
 0x9b1   :  { %v3841_v58 = vpop.eup %3840  ;;  %v2834_v10 = vadd.f32 %v3251_v29, %v2813_v18  ;;  %v2852_v31 = vmul.f32 %v3839_v25, %v3252_v21 }
 0x9b2   :  { %3850 = vtanh.f32 %v2835_v52  ;;  %v2851_v54 = vmul.f32 %v3841_v58, %v3252_v21 }
 0x9b3   :  { %3852 = vtanh.f32 %v2834_v10  ;;  %v2862_v60 = vsel %vm2614_vm5, %v2852_v31, 0.0 }
 0x9b4   :  { %v3843_v41 = vpop.eup %3842  ;;  %v2859_v53 = vsel %vm2614_vm5, %v2851_v54, 0.0 }
 0x9b5   :  { %v3845_v23 = vpop.eup %3844  ;;  %2860 = vadd.xlane.f32.xlu0 %v2859_v53  ;;  %v2854_v5 = vmul.f32 %v3843_v41, %v3252_v21 }
 0x9b6   :  { %v2853_v3 = vmul.f32 %v3845_v23, %v3252_v21 }
 0x9b7   :  { %v2868_v15 = vsel %vm2614_vm5, %v2854_v5, 0.0 }
 0x9b8   :  { %v3847_v34 = vpop.eup %3846  ;;  %v2865_v51 = vsel %vm2614_vm5, %v2853_v3, 0.0 }
 0x9b9   :  { %v3849_v12 = vpop.eup %3848  ;;  %2866 = vadd.xlane.f32.xlu1 %v2865_v51  ;;  %2863 = vadd.xlane.f32.xlu0 %v2862_v60  ;;  %v2856_v59 = vmul.f32 %v3847_v34, %v3252_v21 }
 0x9ba   :  { %v2855_v42 = vmul.f32 %v3849_v12, %v3252_v21 }
 0x9bb   :  { %v2874_v57 = vsel %vm2614_vm5, %v2856_v59, 0.0 }
 0x9bc   :  { %v3851_v49 = vpop.eup %3850  ;;  %v2871_v8 = vsel %vm2614_vm5, %v2855_v42, 0.0 }
 0x9bd   :  { %v3853_v61 = vpop.eup %3852  ;;  %2869 = vadd.xlane.f32.xlu1 %v2868_v15  ;;  %2872 = vadd.xlane.f32.xlu0 %v2871_v8  ;;  %v2858_v62 = vmul.f32 %v3851_v49, %v3252_v21 }
 0x9be   :  { %v2857_v37 = vmul.f32 %v3853_v61, %v3252_v21 }
 0x9bf   :  { %v2880_v2 = vsel %vm2614_vm5, %v2858_v62, 0.0 }
 0x9c0   :  { %v2877_v40 = vsel %vm2614_vm5, %v2857_v37, 0.0 }
 0x9c1   :  { %2875 = vadd.xlane.f32.xlu1 %v2874_v57  ;;  %2878 = vadd.xlane.f32.xlu0 %v2877_v40 }
 0x9c5   :  { %2881 = vadd.xlane.f32.xlu1 %v2880_v2 }
 0xa42   :  { %v2861_v13 = vpop.xlane.xlu0 %2860 }
 0xa43   :  { %v2890_v6 = vadd.f32 %v3253_v22, %v2861_v13 }
 0xa46   :  { %v2867_v19 = vpop.xlane.xlu1 %2866  ;;  %v2864_v20 = vpop.xlane.xlu0 %2863 }
 0xa47   :  { %v2891_v26 = vadd.f32 %v3253_v22, %v2864_v20  ;;  %v2892_v27 = vadd.f32 %v3253_v22, %v2867_v19 }
 0xa49   :  { %v2898_v29 = vmax.f32 %v2890_v6, %v2891_v26 }
 0xa4a   :  { %v2870_v43 = vpop.xlane.xlu1 %2869  ;;  %v2873_v7 = vpop.xlane.xlu0 %2872 }
 0xa4b   :  { %v2893_v30 = vadd.f32 %v3253_v22, %v2870_v43  ;;  %v2899_v32 = vmax.f32 %v2898_v29, %v2892_v27  ;;  %v2894_v45 = vadd.f32 %v3253_v22, %v2873_v7 }
 0xa4d   :  { %v2900_v33 = vmax.f32 %v2899_v32, %v2893_v30 }
 0xa4e   :  { %v2876_v1 = vpop.xlane.xlu1 %2875  ;;  %v2879_v38 = vpop.xlane.xlu0 %2878 }
 0xa4f   :  { %v2901_v56 = vmax.f32 %v2900_v33, %v2894_v45  ;;  %v2895_v47 = vadd.f32 %v3253_v22, %v2876_v1  ;;  %v2896_v46 = vadd.f32 %v3253_v22, %v2879_v38 }
 0xa51   :  { %v2902_v48 = vmax.f32 %v2901_v56, %v2895_v47 }
 0xa52   :  { %v2882_v16 = vpop.xlane.xlu1 %2881 }
 0xa53   :  { %v2903_v35 = vmax.f32 %v2902_v48, %v2896_v46  ;;  %v2897_v14 = vadd.f32 %v3253_v22, %v2882_v16 }
 0xa55   :  { %v2904_v50 = vmax.f32 %v2903_v35, %v2897_v14 }
 0xa57   :  { %v2905_v0 = vsub.f32 %v2890_v6, %v2904_v50  ;;  %v2908_v9 = vsub.f32 %v2891_v26, %v2904_v50  ;;  %v2911_v36 = vsub.f32 %v2892_v27, %v2904_v50  ;;  %v2914_v17 = vsub.f32 %v2893_v30, %v2904_v50 }
 0xa58   :  { %v2917_v52 = vsub.f32 %v2894_v45, %v2904_v50  ;;  %v2920_v10 = vsub.f32 %v2895_v47, %v2904_v50  ;;  %v2923_v41 = vsub.f32 %v2896_v46, %v2904_v50  ;;  %v2926_v31 = vsub.f32 %v2897_v14, %v2904_v50 }
 0xa59   :  { %v2906_v18 = vmul.f32 1.442695, %v2905_v0  ;;  %v2909_v21 = vmul.f32 1.442695, %v2908_v9  ;;  %v2912_v25 = vmul.f32 1.442695, %v2911_v36 }
 0xa5a   :  { %v2915_v58 = vmul.f32 1.442695, %v2914_v17  ;;  %v2918_v54 = vmul.f32 1.442695, %v2917_v52  ;;  %v2921_v53 = vmul.f32 1.442695, %v2920_v10 }
 0xa5b   :  { %3854 = vpow2.f32 %v2906_v18  ;;  %v2924_v23 = vmul.f32 1.442695, %v2923_v41  ;;  %v2927_v3 = vmul.f32 1.442695, %v2926_v31 }
 0xa5c   :  { %3856 = vpow2.f32 %v2909_v21 }
 0xa5d   :  { %3858 = vpow2.f32 %v2912_v25 }
 0xa5e   :  { %3860 = vpow2.f32 %v2915_v58 }
 0xa5f   :  { %3862 = vpow2.f32 %v2918_v54 }
 0xa60   :  { %3864 = vpow2.f32 %v2921_v53 }
 0xa61   :  { %3866 = vpow2.f32 %v2924_v23 }
 0xa62   :  { %3868 = vpow2.f32 %v2927_v3 }
 0xa65   :  { %v3855_v34 = vpop.eup %3854 }
 0xa66   :  { %v3857_v51 = vpop.eup %3856 }
 0xa67   :  { %v2929_v60 = vadd.f32 %v3857_v51, %v3855_v34  ;;  %v3859_v5 = vpop.eup %3858 }
 0xa68   :  { %v3861_v42 = vpop.eup %3860 }
 0xa69   :  { %v2930_v12 = vadd.f32 %v3859_v5, %v2929_v60  ;;  %v3863_v15 = vpop.eup %3862 }
 0xa6a   :  { %v3865_v59 = vpop.eup %3864 }
 0xa6b   :  { %v2931_v49 = vadd.f32 %v3861_v42, %v2930_v12  ;;  %v3867_v37 = vpop.eup %3866 }
 0xa6c   :  { %v3869_v40 = vpop.eup %3868 }
 0xa6d   :  { %v2932_v8 = vadd.f32 %v3863_v15, %v2931_v49 }
 0xa6f   :  { %v2933_v61 = vadd.f32 %v3865_v59, %v2932_v8 }
 0xa71   :  { %v2934_v57 = vadd.f32 %v3867_v37, %v2933_v61 }
 0xa73   :  { %v2935_v62 = vadd.f32 %v3869_v40, %v2934_v57 }
 0xa75   :  { %3870 = vrcp.f32 %v2935_v62 }
 0xa7f   :  { %v3871_v2 = vpop.eup %3870 }
 0xa80   :  { %v2947_v13 = vmul.f32 %v3871_v2, %v3857_v51  ;;  %v2938_v22 = vmul.f32 %v3871_v2, %v3855_v34  ;;  %v2956_v19 = vmul.f32 %v3871_v2, %v3859_v5  ;;  %v2965_v20 = vmul.f32 %v3871_v2, %v3861_v42 }
 0xa81   :  { %v2974_v6 = vmul.f32 %v3871_v2, %v3863_v15  ;;  %v2983_v26 = vmul.f32 %v3871_v2, %v3865_v59  ;;  %v2992_v27 = vmul.f32 %v3871_v2, %v3867_v37  ;;  %v3001_v29 = vmul.f32 %v3871_v2, %v3869_v40 }
 0xa82   :  { %2951 = vperm.xlu1 %3637, %v2947_v13   ;;  %2942 = vperm.xlu0 %3636, %v2938_v22  }
 0xa86   :  { %2960 = vperm.xlu1 %3637, %v2956_v19  }
 0xa8a   :  { %2969 = vperm.xlu1 %3637, %v2965_v20  }
 0xa8e   :  { %2978 = vperm.xlu1 %3637, %v2974_v6  }
 0xa92   :  { %2987 = vperm.xlu1 %3637, %v2983_v26  }
 0xa96   :  { %2996 = vperm.xlu1 %3637, %v2992_v27  }
 0xa9a   :  { %3004 = vperm.xlu1 %3637, %v3001_v29  }
 0xb01   :  { %v2952_v43 = vpop.permute.xlu1 %2951  ;;  %v2943_v30 = vpop.permute.xlu0 %2942 }
 0xb02   :  { %v2954_v33 = vmul.f32 %v2952_v43, %v5086_v39  ;;  %v2945_v45 = vmul.f32 %v2943_v30, %v5079_v44 }
 0xb04   :  { %v2955_v56 = vadd.f32 %v2954_v33, %v2945_v45 }
 0xb05   :  { %v2961_v7 = vpop.permute.xlu1 %2960 }
 0xb06   :  { %v2963_v38 = vmul.f32 %v2961_v7, %v5093_v11 }
 0xb08   :  { %v2964_v46 = vadd.f32 %v2963_v38, %v2955_v56 }
 0xb09   :  { %v2970_v32 = vpop.permute.xlu1 %2969 }
 0xb0a   :  { %v2972_v47 = vmul.f32 %v2970_v32, %v5100_v63 }
 0xb0c   :  { %v2973_v35 = vadd.f32 %v2972_v47, %v2964_v46 }
 0xb0d   :  { %v2979_v1 = vpop.permute.xlu1 %2978 }
 0xb0e   :  { %v2981_v16 = vmul.f32 %v2979_v1, %v5107_v4 }
 0xb10   :  { %v2982_v0 = vadd.f32 %v2981_v16, %v2973_v35 }
 0xb11   :  { %v2988_v48 = vpop.permute.xlu1 %2987 }
 0xb12   :  { %v2990_v14 = vmul.f32 %v2988_v48, %v5114_v55 }
 0xb14   :  { %v2991_v39 = vadd.f32 %v2990_v14, %v2982_v0 }
 0xb15   :  { %v2997_v50 = vpop.permute.xlu1 %2996 }
 0xb16   :  { %v2999_v9 = vmul.f32 %v2997_v50, %v5121_v24 }
 0xb18   :  { %v3000_v44 = vadd.f32 %v2999_v9, %v2991_v39 }
 0xb19   :  { %v3005_v36 = vpop.permute.xlu1 %3004 }
 0xb1a   :  { %v3007_v11 = vmul.f32 %v3005_v36, %v5127_v28 }
 0xb1c   :  { %v3008_v17 = vadd.f32 %v3007_v11, %v3000_v44 }
 0xb1e   :  { %3009 = vst [vmem:[#allocation14] sm:$0xff] %v3008_v17 }
 0xb1f   :  { %3971 = shalt.err (!%p3968_p8)
}
 0xb20   :  { %s3972_s19 = scalar_lea.hbm %s5176_s11, 128 }
 0xb21   :  { %p3973_p9 = scmp.ne.s32.totalorder %s5176_s11, %s3972_s19  ;;  %p3976_p10 = scmp.lt.u32.totalorder %s3972_s19, %s5176_s11 }
 0xb23   :  { %p3978_p11 = pnand %p3976_p10, %p3973_p9 }
 0xb25   :  { %3981 = shalt.err (!%p3978_p11)
}
 0xb26   :  { %3019 = dma.vmem_to_hbm [thread:$0]  %s3017_s2, 128, %s5176_s11, [#allocation8]  }
 0xb27   :  { %3988 = dma.done.wait [#allocation8], 128  }
 0xb28   :  { %3989 = vsyncadd [#allocation8], 4294967168 }
 0xb29   :  { %3023 = vsyncpa [#allocation7], 1 }
 0xb2a   :  { %3024 = vsyncpa [#allocation10], 1 }
 0xb2b   :  { %3025 = vsyncpa [#allocation13], 1 }
 0xb2c   :  { %3026 = vsyncpa [#allocation8], 1 }

</bundles_post_ra>
